<compile_context>
chip_gen: v5e
topology: v5e:2x2
jax: 0.10.0
libtpu: 0.0.40
codegen_flags: <defaults>
</compile_context>

<pallas_src>
import functools

import jax
import jax.numpy as jnp
from jax import lax
from jax.experimental import pallas as pl
from jax.experimental.pallas import tpu as pltpu


def _round_up(x, m):
    return ((x + m - 1) // m) * m


def _cbow_kernel(ids_ref, emb_ref, w_ref, b_ref, out_ref,
                 es_ref, m_ref, s_ref, *, tb, tv, nv, C, w_resident):
    i = pl.program_id(0)          # batch tile index
    j = pl.program_id(1)          # vocab (logits) tile index

    # ---- prologue (once per batch tile): embedding gather + context sum ----
    @pl.when(j == 0)
    def _prologue():
        def gather_group(g, carry):
            # 8 examples -> one full-sublane (8, Ep) store (vs. 1/8-masked
            # single-row stores); 8*C independent row loads give LLO plenty of
            # ILP even when the outer loop stays rolled.
            rows = []
            for r in range(8):                       # static unroll over sublanes
                base = (i * tb + g * 8 + r) * C
                acc = emb_ref[pl.ds(ids_ref[base], 1), :].astype(jnp.float32)
                for c in range(1, C):                # static unroll over context
                    acc = acc + emb_ref[pl.ds(ids_ref[base + c], 1), :].astype(
                        jnp.float32)
                rows.append(acc)
            es_ref[pl.ds(pl.multiple_of(g * 8, 8), 8), :] = jnp.concatenate(
                rows, axis=0)
            return carry

        lax.fori_loop(0, tb // 8, gather_group, 0, unroll=(tb // 8) <= 4)
        # online-softmax running stats for this batch tile
        m_ref[...] = jnp.full((tb, 1), -jnp.inf, jnp.float32)
        s_ref[...] = jnp.zeros((tb, 1), jnp.float32)

    # ---- logits tile on the MXU: embed_sum @ W_tile^T + bias_tile ----------
    w = w_ref[j] if w_resident else w_ref[...]
    if w.dtype != jnp.float32:
        # bf16 weights only buy HBM bandwidth; keep the f32 embed-sum operand
        # and accumulate in f32 so precision stays close to the f32 path.
        w = w.astype(jnp.float32)
    logits = lax.dot_general(es_ref[...], w, (((1,), (1,)), ((), ())),
                             preferred_element_type=jnp.float32)
    logits = logits + b_ref[j]                       # (1, tv); padded cols = -inf

    # ---- online softmax stats (hidden under the pipelined weight DMA) ------
    m_prev = m_ref[...]
    m_new = jnp.maximum(m_prev, jnp.max(logits, axis=1, keepdims=True))
    s_ref[...] = (s_ref[...] * jnp.exp(m_prev - m_new)
                  + jnp.sum(jnp.exp(logits - m_new), axis=1, keepdims=True))
    m_ref[...] = m_new

    # ---- store raw logits straight into the resident output row ------------
    # Static lane slices gated by pl.when keep every store lane-dense and avoid
    # dynamic minormost-dim indexing (only one branch executes per step).
    for jj in range(nv):
        @pl.when(j == jj)
        def _store(jj=jj):
            out_ref[:, pl.ds(jj * tv, tv)] = logits

    # ---- epilogue: single subtract pass converts logits -> log-probs -------
    @pl.when(j == nv - 1)
    def _epilogue():
        lse = m_ref[...] + jnp.log(s_ref[...])
        for jj in range(nv):                         # static, lane-dense slices
            sl = pl.ds(jj * tv, tv)
            out_ref[:, sl] = out_ref[:, sl] - lse


def _vmem_need(tb, tv, Vp, Ep, nv, isz, single_buffer, w_resident):
    bufs = 1 if single_buffer else 2
    table = bufs * Vp * Ep * isz                     # resident embedding table
    w = bufs * Vp * Ep * isz if w_resident else 2 * tv * Ep * isz
    bias = bufs * nv * 8 * tv * 4                    # (nv,1,tv), sublane-padded
    out = 2 * tb * Vp * 4                            # resident output row (dbl-buf)
    es = tb * Ep * 4                                 # embed-sum scratch
    stats = 2 * tb * 128 * 4                         # m/s scratch (lane-padded)
    return table + w + bias + out + es + stats


def simple_cbow_forward(inputs, emb_table, linear_w, linear_b,
                        *, param_dtype=jnp.bfloat16):
    """inputs: (B, C) int; emb_table: (V, E); linear_w: (V, E); linear_b: (V,).

    Returns (B, V) float32 log-probabilities (== PyTorch SimpleCBOW.forward).
    """
    B, C = inputs.shape
    V, E = emb_table.shape
    Ep = _round_up(E, 128)                 # lane-aligned contraction dim
    isz = jnp.dtype(param_dtype).itemsize

    # --- physical-VMEM-aware budget (64 MiB on v7x, 128 MiB on v5e/v6e) -----
    try:
        info = pltpu.get_tpu_info()
        vmem_cap = int(getattr(info, "vmem_capacity_bytes", 0) or 0) or (64 << 20)
    except Exception:
        vmem_cap = 64 << 20
    budget = (vmem_cap * 9) // 10

    single_buffer = hasattr(pl, "Buffered")

    # --- tile selection: biggest (8,128)-aligned tiles that fit the budget --
    tb = min(_round_up(B, 8), 256)         # batch tile (sublane-aligned, MXU M)
    tv = min(_round_up(V, 128), 1024)      # vocab tile (lane-aligned, MXU N)
    while True:
        Bp = _round_up(B, tb)
        Vp = _round_up(V, tv)
        nb, nv = Bp // tb, Vp // tv
        # Resident weight only pays off when it would otherwise be re-streamed
        # per batch tile (nb > 1) and only if it fits.
        w_resident = nb > 1 and _vmem_need(tb, tv, Vp, Ep, nv, isz,
                                           single_buffer, True) <= budget
        need = _vmem_need(tb, tv, Vp, Ep, nv, isz, single_buffer, w_resident)
        if need <= budget or (tb <= 8 and tv <= 128):
            break
        if tb > 8:
            tb = max(8, _round_up(tb // 2, 8))
        else:
            tv = max(128, _round_up(tv // 2, 128))
    vmem_limit = int(min(budget, max(need + need // 4, 16 * 1024 * 1024)))

    # --- pad / lay out operands ----------------------------------------------
    ids = jnp.zeros((Bp, C), jnp.int32).at[:B].set(inputs.astype(jnp.int32))
    ids_flat = ids.reshape(Bp * C)         # flat 1-D -> compact SMEM layout

    emb_p = jnp.zeros((Vp, Ep), param_dtype).at[:V, :E].set(
        emb_table.astype(param_dtype))
    w_full = jnp.zeros((Vp, Ep), param_dtype).at[:V, :E].set(
        linear_w.astype(param_dtype))
    w_arg = w_full.reshape(nv, tv, Ep) if w_resident else w_full
    # Padded vocab columns get a -inf bias so the log-softmax stays exact.
    bias_arg = jnp.full((Vp,), -jnp.inf, jnp.float32).at[:V].set(
        linear_b.astype(jnp.float32)).reshape(nv, 1, tv)

    kernel = functools.partial(_cbow_kernel, tb=tb, tv=tv, nv=nv, C=C,
                               w_resident=w_resident)

    def _build(single_buf):
        def _resident(shape):
            if single_buf:
                return pl.BlockSpec(shape, lambda i, j, ids: (0,) * len(shape),
                                    pipeline_mode=pl.Buffered(1))
            return pl.BlockSpec(shape, lambda i, j, ids: (0,) * len(shape))

        emb_spec = _resident((Vp, Ep))                       # table: fetched once
        if w_resident:
            w_spec = _resident((nv, tv, Ep))                 # weight: fetched once
        else:
            w_spec = pl.BlockSpec((tv, Ep), lambda i, j, ids: (j, 0))  # streamed
        b_spec = _resident((nv, 1, tv))                      # bias: fetched once

        return pl.pallas_call(
            kernel,
            out_shape=jax.ShapeDtypeStruct((Bp, Vp), jnp.float32),
            grid_spec=pltpu.PrefetchScalarGridSpec(
                num_scalar_prefetch=1,                       # token ids -> SMEM
                grid=(nb, nv),
                in_specs=[emb_spec, w_spec, b_spec],
                out_specs=pl.BlockSpec((tb, Vp), lambda i, j, ids: (i, 0)),
                scratch_shapes=[
                    pltpu.VMEM((tb, Ep), jnp.float32),       # embed-sum
                    pltpu.VMEM((tb, 1), jnp.float32),        # running max
                    pltpu.VMEM((tb, 1), jnp.float32),        # running sum
                ],
            ),
            compiler_params=pltpu.CompilerParams(
                dimension_semantics=("parallel", "arbitrary"),
                vmem_limit_bytes=vmem_limit),
        )

    try:
        out_p = _build(single_buffer)(ids_flat, emb_p, w_arg, bias_arg)
    except Exception:
        # Fallback if pl.Buffered(1) is rejected by this Mosaic version.
        out_p = _build(False)(ids_flat, emb_p, w_arg, bias_arg)

    return out_p[:B, :V]


if __name__ == "__main__":
    # Small shapes consistent with the module:
    #   vocab_size = 20, embedding_size = 10, batch = 4, context window = 4
    vocab_size = 20
    embedding_size = 10
    batch = 4
    context = 4

    key = jax.random.PRNGKey(0)
    k_ids, k_emb, k_w, k_b, k_ids2 = jax.random.split(key, 5)

    inputs = jax.random.randint(k_ids, (batch, context), 0, vocab_size,
                                dtype=jnp.int32)
    emb_table = jax.random.normal(k_emb, (vocab_size, embedding_size),
                                  dtype=jnp.float32)
    linear_w = jax.random.normal(k_w, (vocab_size, embedding_size),
                                 dtype=jnp.float32) * 0.1
    linear_b = jax.random.normal(k_b, (vocab_size,), dtype=jnp.float32) * 0.1

    def ref_forward(ids):
        embeds = emb_table[ids]                              # (B, C, E)
        return jax.nn.log_softmax(
            jnp.sum(embeds, axis=1) @ linear_w.T + linear_b, axis=1)

    # f32 path: exact PyTorch semantics.
    out_f32 = jax.block_until_ready(
        simple_cbow_forward(inputs, emb_table, linear_w, linear_b,
                            param_dtype=jnp.float32))
    assert out_f32.shape == (batch, vocab_size)
    assert jnp.allclose(out_f32, ref_forward(inputs), atol=1e-5, rtol=1e-5)

    # Default bf16-weight path (f32 accumulation / f32 elementwise).
    out_bf16 = jax.block_until_ready(
        simple_cbow_forward(inputs, emb_table, linear_w, linear_b))
    assert jnp.allclose(out_bf16, ref_forward(inputs), atol=5e-2, rtol=5e-2)

    # Larger batch: multiple batch tiles -> exercises the resident-weight path,
    # the vectorized gather groups, and the megacore-parallel batch axis.
    big_inputs = jax.random.randint(k_ids2, (600, context), 0, vocab_size,
                                    dtype=jnp.int32)
    out_big = jax.block_until_ready(
        simple_cbow_forward(big_inputs, emb_table, linear_w, linear_b))
    assert out_big.shape == (600, vocab_size)
    assert jnp.allclose(out_big, ref_forward(big_inputs), atol=5e-2, rtol=5e-2)

    print("KERNEL_OK")
</pallas_src>

<mosaic_0001>
module attributes {stable_mosaic.version = 11 : i64} {
  func.func @_cbow_kernel(%arg0: i32, %arg1: i32, %arg2: memref<32xi32, #tpu.memory_space<smem>>, %arg3: memref<128x128xf32, #tpu.memory_space<vmem>>, %arg4: memref<128x128xf32, #tpu.memory_space<vmem>>, %arg5: memref<1x1x128xf32, #tpu.memory_space<vmem>>, %arg6: memref<8x128xf32, #tpu.memory_space<vmem>>, %arg7: memref<8x128xf32, #tpu.memory_space<vmem>>, %arg8: memref<8x1xf32, #tpu.memory_space<vmem>>, %arg9: memref<8x1xf32, #tpu.memory_space<vmem>>) attributes {dimension_semantics = [#tpu.dimension_semantics<parallel>, #tpu.dimension_semantics<arbitrary>], iteration_bounds = array<i64: 1, 1>, scalar_prefetch = 1 : i64, scratch_operands = 3 : i64, tpu.core_type = #tpu.core_type<tc>, window_params = [{pipeline_mode = #tpu.pipeline_mode<synchronous>, transform_indices = @transform_0, window_bounds = array<i64: 128, 128>}, {transform_indices = @transform_1, window_bounds = array<i64: 128, 128>}, {pipeline_mode = #tpu.pipeline_mode<synchronous>, transform_indices = @transform_2, window_bounds = array<i64: 1, 1, 128>}, {transform_indices = @transform_3, window_bounds = array<i64: 8, 128>}]} {
    %c0_i32 = arith.constant 0 : i32
    %0 = arith.cmpi eq, %arg1, %c0_i32 : i32
    %1 = arith.extui %0 : i1 to i32
    %c0_i32_0 = arith.constant 0 : i32
    %2 = arith.cmpi ne, %1, %c0_i32_0 : i32
    scf.if %2 {
      %c0_i32_20 = arith.constant 0 : i32
      %c8_i32 = arith.constant 8 : i32
      %33 = arith.muli %arg0, %c8_i32 : i32
      %c8_i32_21 = arith.constant 8 : i32
      %34 = arith.muli %c0_i32_20, %c8_i32_21 : i32
      %35 = arith.addi %33, %34 : i32
      %c0_i32_22 = arith.constant 0 : i32
      %36 = arith.addi %35, %c0_i32_22 : i32
      %c4_i32 = arith.constant 4 : i32
      %37 = arith.muli %36, %c4_i32 : i32
      %38 = arith.index_cast %37 : i32 to index
      %39 = memref.load %arg2[%38] : memref<32xi32, #tpu.memory_space<smem>>
      %40 = arith.index_cast %39 : i32 to index
      %c0_23 = arith.constant 0 : index
      %41 = vector.load %arg3[%40, %c0_23] : memref<128x128xf32, #tpu.memory_space<vmem>>, vector<1x128xf32>
      %c1_i32 = arith.constant 1 : i32
      %42 = arith.addi %37, %c1_i32 : i32
      %43 = arith.index_cast %42 : i32 to index
      %44 = memref.load %arg2[%43] : memref<32xi32, #tpu.memory_space<smem>>
      %45 = arith.index_cast %44 : i32 to index
      %c0_24 = arith.constant 0 : index
      %46 = vector.load %arg3[%45, %c0_24] : memref<128x128xf32, #tpu.memory_space<vmem>>, vector<1x128xf32>
      %47 = arith.addf %41, %46 : vector<1x128xf32>
      %c2_i32 = arith.constant 2 : i32
      %48 = arith.addi %37, %c2_i32 : i32
      %49 = arith.index_cast %48 : i32 to index
      %50 = memref.load %arg2[%49] : memref<32xi32, #tpu.memory_space<smem>>
      %51 = arith.index_cast %50 : i32 to index
      %c0_25 = arith.constant 0 : index
      %52 = vector.load %arg3[%51, %c0_25] : memref<128x128xf32, #tpu.memory_space<vmem>>, vector<1x128xf32>
      %53 = arith.addf %47, %52 : vector<1x128xf32>
      %c3_i32 = arith.constant 3 : i32
      %54 = arith.addi %37, %c3_i32 : i32
      %55 = arith.index_cast %54 : i32 to index
      %56 = memref.load %arg2[%55] : memref<32xi32, #tpu.memory_space<smem>>
      %57 = arith.index_cast %56 : i32 to index
      %c0_26 = arith.constant 0 : index
      %58 = vector.load %arg3[%57, %c0_26] : memref<128x128xf32, #tpu.memory_space<vmem>>, vector<1x128xf32>
      %59 = arith.addf %53, %58 : vector<1x128xf32>
      %c8_i32_27 = arith.constant 8 : i32
      %60 = arith.muli %arg0, %c8_i32_27 : i32
      %c8_i32_28 = arith.constant 8 : i32
      %61 = arith.muli %c0_i32_20, %c8_i32_28 : i32
      %62 = arith.addi %60, %61 : i32
      %c1_i32_29 = arith.constant 1 : i32
      %63 = arith.addi %62, %c1_i32_29 : i32
      %c4_i32_30 = arith.constant 4 : i32
      %64 = arith.muli %63, %c4_i32_30 : i32
      %65 = arith.index_cast %64 : i32 to index
      %66 = memref.load %arg2[%65] : memref<32xi32, #tpu.memory_space<smem>>
      %67 = arith.index_cast %66 : i32 to index
      %c0_31 = arith.constant 0 : index
      %68 = vector.load %arg3[%67, %c0_31] : memref<128x128xf32, #tpu.memory_space<vmem>>, vector<1x128xf32>
      %c1_i32_32 = arith.constant 1 : i32
      %69 = arith.addi %64, %c1_i32_32 : i32
      %70 = arith.index_cast %69 : i32 to index
      %71 = memref.load %arg2[%70] : memref<32xi32, #tpu.memory_space<smem>>
      %72 = arith.index_cast %71 : i32 to index
      %c0_33 = arith.constant 0 : index
      %73 = vector.load %arg3[%72, %c0_33] : memref<128x128xf32, #tpu.memory_space<vmem>>, vector<1x128xf32>
      %74 = arith.addf %68, %73 : vector<1x128xf32>
      %c2_i32_34 = arith.constant 2 : i32
      %75 = arith.addi %64, %c2_i32_34 : i32
      %76 = arith.index_cast %75 : i32 to index
      %77 = memref.load %arg2[%76] : memref<32xi32, #tpu.memory_space<smem>>
      %78 = arith.index_cast %77 : i32 to index
      %c0_35 = arith.constant 0 : index
      %79 = vector.load %arg3[%78, %c0_35] : memref<128x128xf32, #tpu.memory_space<vmem>>, vector<1x128xf32>
      %80 = arith.addf %74, %79 : vector<1x128xf32>
      %c3_i32_36 = arith.constant 3 : i32
      %81 = arith.addi %64, %c3_i32_36 : i32
      %82 = arith.index_cast %81 : i32 to index
      %83 = memref.load %arg2[%82] : memref<32xi32, #tpu.memory_space<smem>>
      %84 = arith.index_cast %83 : i32 to index
      %c0_37 = arith.constant 0 : index
      %85 = vector.load %arg3[%84, %c0_37] : memref<128x128xf32, #tpu.memory_space<vmem>>, vector<1x128xf32>
      %86 = arith.addf %80, %85 : vector<1x128xf32>
      %c8_i32_38 = arith.constant 8 : i32
      %87 = arith.muli %arg0, %c8_i32_38 : i32
      %c8_i32_39 = arith.constant 8 : i32
      %88 = arith.muli %c0_i32_20, %c8_i32_39 : i32
      %89 = arith.addi %87, %88 : i32
      %c2_i32_40 = arith.constant 2 : i32
      %90 = arith.addi %89, %c2_i32_40 : i32
      %c4_i32_41 = arith.constant 4 : i32
      %91 = arith.muli %90, %c4_i32_41 : i32
      %92 = arith.index_cast %91 : i32 to index
      %93 = memref.load %arg2[%92] : memref<32xi32, #tpu.memory_space<smem>>
      %94 = arith.index_cast %93 : i32 to index
      %c0_42 = arith.constant 0 : index
      %95 = vector.load %arg3[%94, %c0_42] : memref<128x128xf32, #tpu.memory_space<vmem>>, vector<1x128xf32>
      %c1_i32_43 = arith.constant 1 : i32
      %96 = arith.addi %91, %c1_i32_43 : i32
      %97 = arith.index_cast %96 : i32 to index
      %98 = memref.load %arg2[%97] : memref<32xi32, #tpu.memory_space<smem>>
      %99 = arith.index_cast %98 : i32 to index
      %c0_44 = arith.constant 0 : index
      %100 = vector.load %arg3[%99, %c0_44] : memref<128x128xf32, #tpu.memory_space<vmem>>, vector<1x128xf32>
      %101 = arith.addf %95, %100 : vector<1x128xf32>
      %c2_i32_45 = arith.constant 2 : i32
      %102 = arith.addi %91, %c2_i32_45 : i32
      %103 = arith.index_cast %102 : i32 to index
      %104 = memref.load %arg2[%103] : memref<32xi32, #tpu.memory_space<smem>>
      %105 = arith.index_cast %104 : i32 to index
      %c0_46 = arith.constant 0 : index
      %106 = vector.load %arg3[%105, %c0_46] : memref<128x128xf32, #tpu.memory_space<vmem>>, vector<1x128xf32>
      %107 = arith.addf %101, %106 : vector<1x128xf32>
      %c3_i32_47 = arith.constant 3 : i32
      %108 = arith.addi %91, %c3_i32_47 : i32
      %109 = arith.index_cast %108 : i32 to index
      %110 = memref.load %arg2[%109] : memref<32xi32, #tpu.memory_space<smem>>
      %111 = arith.index_cast %110 : i32 to index
      %c0_48 = arith.constant 0 : index
      %112 = vector.load %arg3[%111, %c0_48] : memref<128x128xf32, #tpu.memory_space<vmem>>, vector<1x128xf32>
      %113 = arith.addf %107, %112 : vector<1x128xf32>
      %c8_i32_49 = arith.constant 8 : i32
      %114 = arith.muli %arg0, %c8_i32_49 : i32
      %c8_i32_50 = arith.constant 8 : i32
      %115 = arith.muli %c0_i32_20, %c8_i32_50 : i32
      %116 = arith.addi %114, %115 : i32
      %c3_i32_51 = arith.constant 3 : i32
      %117 = arith.addi %116, %c3_i32_51 : i32
      %c4_i32_52 = arith.constant 4 : i32
      %118 = arith.muli %117, %c4_i32_52 : i32
      %119 = arith.index_cast %118 : i32 to index
      %120 = memref.load %arg2[%119] : memref<32xi32, #tpu.memory_space<smem>>
      %121 = arith.index_cast %120 : i32 to index
      %c0_53 = arith.constant 0 : index
      %122 = vector.load %arg3[%121, %c0_53] : memref<128x128xf32, #tpu.memory_space<vmem>>, vector<1x128xf32>
      %c1_i32_54 = arith.constant 1 : i32
      %123 = arith.addi %118, %c1_i32_54 : i32
      %124 = arith.index_cast %123 : i32 to index
      %125 = memref.load %arg2[%124] : memref<32xi32, #tpu.memory_space<smem>>
      %126 = arith.index_cast %125 : i32 to index
      %c0_55 = arith.constant 0 : index
      %127 = vector.load %arg3[%126, %c0_55] : memref<128x128xf32, #tpu.memory_space<vmem>>, vector<1x128xf32>
      %128 = arith.addf %122, %127 : vector<1x128xf32>
      %c2_i32_56 = arith.constant 2 : i32
      %129 = arith.addi %118, %c2_i32_56 : i32
      %130 = arith.index_cast %129 : i32 to index
      %131 = memref.load %arg2[%130] : memref<32xi32, #tpu.memory_space<smem>>
      %132 = arith.index_cast %131 : i32 to index
      %c0_57 = arith.constant 0 : index
      %133 = vector.load %arg3[%132, %c0_57] : memref<128x128xf32, #tpu.memory_space<vmem>>, vector<1x128xf32>
      %134 = arith.addf %128, %133 : vector<1x128xf32>
      %c3_i32_58 = arith.constant 3 : i32
      %135 = arith.addi %118, %c3_i32_58 : i32
      %136 = arith.index_cast %135 : i32 to index
      %137 = memref.load %arg2[%136] : memref<32xi32, #tpu.memory_space<smem>>
      %138 = arith.index_cast %137 : i32 to index
      %c0_59 = arith.constant 0 : index
      %139 = vector.load %arg3[%138, %c0_59] : memref<128x128xf32, #tpu.memory_space<vmem>>, vector<1x128xf32>
      %140 = arith.addf %134, %139 : vector<1x128xf32>
      %c8_i32_60 = arith.constant 8 : i32
      %141 = arith.muli %arg0, %c8_i32_60 : i32
      %c8_i32_61 = arith.constant 8 : i32
      %142 = arith.muli %c0_i32_20, %c8_i32_61 : i32
      %143 = arith.addi %141, %142 : i32
      %c4_i32_62 = arith.constant 4 : i32
      %144 = arith.addi %143, %c4_i32_62 : i32
      %c4_i32_63 = arith.constant 4 : i32
      %145 = arith.muli %144, %c4_i32_63 : i32
      %146 = arith.index_cast %145 : i32 to index
      %147 = memref.load %arg2[%146] : memref<32xi32, #tpu.memory_space<smem>>
      %148 = arith.index_cast %147 : i32 to index
      %c0_64 = arith.constant 0 : index
      %149 = vector.load %arg3[%148, %c0_64] : memref<128x128xf32, #tpu.memory_space<vmem>>, vector<1x128xf32>
      %c1_i32_65 = arith.constant 1 : i32
      %150 = arith.addi %145, %c1_i32_65 : i32
      %151 = arith.index_cast %150 : i32 to index
      %152 = memref.load %arg2[%151] : memref<32xi32, #tpu.memory_space<smem>>
      %153 = arith.index_cast %152 : i32 to index
      %c0_66 = arith.constant 0 : index
      %154 = vector.load %arg3[%153, %c0_66] : memref<128x128xf32, #tpu.memory_space<vmem>>, vector<1x128xf32>
      %155 = arith.addf %149, %154 : vector<1x128xf32>
      %c2_i32_67 = arith.constant 2 : i32
      %156 = arith.addi %145, %c2_i32_67 : i32
      %157 = arith.index_cast %156 : i32 to index
      %158 = memref.load %arg2[%157] : memref<32xi32, #tpu.memory_space<smem>>
      %159 = arith.index_cast %158 : i32 to index
      %c0_68 = arith.constant 0 : index
      %160 = vector.load %arg3[%159, %c0_68] : memref<128x128xf32, #tpu.memory_space<vmem>>, vector<1x128xf32>
      %161 = arith.addf %155, %160 : vector<1x128xf32>
      %c3_i32_69 = arith.constant 3 : i32
      %162 = arith.addi %145, %c3_i32_69 : i32
      %163 = arith.index_cast %162 : i32 to index
      %164 = memref.load %arg2[%163] : memref<32xi32, #tpu.memory_space<smem>>
      %165 = arith.index_cast %164 : i32 to index
      %c0_70 = arith.constant 0 : index
      %166 = vector.load %arg3[%165, %c0_70] : memref<128x128xf32, #tpu.memory_space<vmem>>, vector<1x128xf32>
      %167 = arith.addf %161, %166 : vector<1x128xf32>
      %c8_i32_71 = arith.constant 8 : i32
      %168 = arith.muli %arg0, %c8_i32_71 : i32
      %c8_i32_72 = arith.constant 8 : i32
      %169 = arith.muli %c0_i32_20, %c8_i32_72 : i32
      %170 = arith.addi %168, %169 : i32
      %c5_i32 = arith.constant 5 : i32
      %171 = arith.addi %170, %c5_i32 : i32
      %c4_i32_73 = arith.constant 4 : i32
      %172 = arith.muli %171, %c4_i32_73 : i32
      %173 = arith.index_cast %172 : i32 to index
      %174 = memref.load %arg2[%173] : memref<32xi32, #tpu.memory_space<smem>>
      %175 = arith.index_cast %174 : i32 to index
      %c0_74 = arith.constant 0 : index
      %176 = vector.load %arg3[%175, %c0_74] : memref<128x128xf32, #tpu.memory_space<vmem>>, vector<1x128xf32>
      %c1_i32_75 = arith.constant 1 : i32
      %177 = arith.addi %172, %c1_i32_75 : i32
      %178 = arith.index_cast %177 : i32 to index
      %179 = memref.load %arg2[%178] : memref<32xi32, #tpu.memory_space<smem>>
      %180 = arith.index_cast %179 : i32 to index
      %c0_76 = arith.constant 0 : index
      %181 = vector.load %arg3[%180, %c0_76] : memref<128x128xf32, #tpu.memory_space<vmem>>, vector<1x128xf32>
      %182 = arith.addf %176, %181 : vector<1x128xf32>
      %c2_i32_77 = arith.constant 2 : i32
      %183 = arith.addi %172, %c2_i32_77 : i32
      %184 = arith.index_cast %183 : i32 to index
      %185 = memref.load %arg2[%184] : memref<32xi32, #tpu.memory_space<smem>>
      %186 = arith.index_cast %185 : i32 to index
      %c0_78 = arith.constant 0 : index
      %187 = vector.load %arg3[%186, %c0_78] : memref<128x128xf32, #tpu.memory_space<vmem>>, vector<1x128xf32>
      %188 = arith.addf %182, %187 : vector<1x128xf32>
      %c3_i32_79 = arith.constant 3 : i32
      %189 = arith.addi %172, %c3_i32_79 : i32
      %190 = arith.index_cast %189 : i32 to index
      %191 = memref.load %arg2[%190] : memref<32xi32, #tpu.memory_space<smem>>
      %192 = arith.index_cast %191 : i32 to index
      %c0_80 = arith.constant 0 : index
      %193 = vector.load %arg3[%192, %c0_80] : memref<128x128xf32, #tpu.memory_space<vmem>>, vector<1x128xf32>
      %194 = arith.addf %188, %193 : vector<1x128xf32>
      %c8_i32_81 = arith.constant 8 : i32
      %195 = arith.muli %arg0, %c8_i32_81 : i32
      %c8_i32_82 = arith.constant 8 : i32
      %196 = arith.muli %c0_i32_20, %c8_i32_82 : i32
      %197 = arith.addi %195, %196 : i32
      %c6_i32 = arith.constant 6 : i32
      %198 = arith.addi %197, %c6_i32 : i32
      %c4_i32_83 = arith.constant 4 : i32
      %199 = arith.muli %198, %c4_i32_83 : i32
      %200 = arith.index_cast %199 : i32 to index
      %201 = memref.load %arg2[%200] : memref<32xi32, #tpu.memory_space<smem>>
      %202 = arith.index_cast %201 : i32 to index
      %c0_84 = arith.constant 0 : index
      %203 = vector.load %arg3[%202, %c0_84] : memref<128x128xf32, #tpu.memory_space<vmem>>, vector<1x128xf32>
      %c1_i32_85 = arith.constant 1 : i32
      %204 = arith.addi %199, %c1_i32_85 : i32
      %205 = arith.index_cast %204 : i32 to index
      %206 = memref.load %arg2[%205] : memref<32xi32, #tpu.memory_space<smem>>
      %207 = arith.index_cast %206 : i32 to index
      %c0_86 = arith.constant 0 : index
      %208 = vector.load %arg3[%207, %c0_86] : memref<128x128xf32, #tpu.memory_space<vmem>>, vector<1x128xf32>
      %209 = arith.addf %203, %208 : vector<1x128xf32>
      %c2_i32_87 = arith.constant 2 : i32
      %210 = arith.addi %199, %c2_i32_87 : i32
      %211 = arith.index_cast %210 : i32 to index
      %212 = memref.load %arg2[%211] : memref<32xi32, #tpu.memory_space<smem>>
      %213 = arith.index_cast %212 : i32 to index
      %c0_88 = arith.constant 0 : index
      %214 = vector.load %arg3[%213, %c0_88] : memref<128x128xf32, #tpu.memory_space<vmem>>, vector<1x128xf32>
      %215 = arith.addf %209, %214 : vector<1x128xf32>
      %c3_i32_89 = arith.constant 3 : i32
      %216 = arith.addi %199, %c3_i32_89 : i32
      %217 = arith.index_cast %216 : i32 to index
      %218 = memref.load %arg2[%217] : memref<32xi32, #tpu.memory_space<smem>>
      %219 = arith.index_cast %218 : i32 to index
      %c0_90 = arith.constant 0 : index
      %220 = vector.load %arg3[%219, %c0_90] : memref<128x128xf32, #tpu.memory_space<vmem>>, vector<1x128xf32>
      %221 = arith.addf %215, %220 : vector<1x128xf32>
      %c8_i32_91 = arith.constant 8 : i32
      %222 = arith.muli %arg0, %c8_i32_91 : i32
      %c8_i32_92 = arith.constant 8 : i32
      %223 = arith.muli %c0_i32_20, %c8_i32_92 : i32
      %224 = arith.addi %222, %223 : i32
      %c7_i32 = arith.constant 7 : i32
      %225 = arith.addi %224, %c7_i32 : i32
      %c4_i32_93 = arith.constant 4 : i32
      %226 = arith.muli %225, %c4_i32_93 : i32
      %227 = arith.index_cast %226 : i32 to index
      %228 = memref.load %arg2[%227] : memref<32xi32, #tpu.memory_space<smem>>
      %229 = arith.index_cast %228 : i32 to index
      %c0_94 = arith.constant 0 : index
      %230 = vector.load %arg3[%229, %c0_94] : memref<128x128xf32, #tpu.memory_space<vmem>>, vector<1x128xf32>
      %c1_i32_95 = arith.constant 1 : i32
      %231 = arith.addi %226, %c1_i32_95 : i32
      %232 = arith.index_cast %231 : i32 to index
      %233 = memref.load %arg2[%232] : memref<32xi32, #tpu.memory_space<smem>>
      %234 = arith.index_cast %233 : i32 to index
      %c0_96 = arith.constant 0 : index
      %235 = vector.load %arg3[%234, %c0_96] : memref<128x128xf32, #tpu.memory_space<vmem>>, vector<1x128xf32>
      %236 = arith.addf %230, %235 : vector<1x128xf32>
      %c2_i32_97 = arith.constant 2 : i32
      %237 = arith.addi %226, %c2_i32_97 : i32
      %238 = arith.index_cast %237 : i32 to index
      %239 = memref.load %arg2[%238] : memref<32xi32, #tpu.memory_space<smem>>
      %240 = arith.index_cast %239 : i32 to index
      %c0_98 = arith.constant 0 : index
      %241 = vector.load %arg3[%240, %c0_98] : memref<128x128xf32, #tpu.memory_space<vmem>>, vector<1x128xf32>
      %242 = arith.addf %236, %241 : vector<1x128xf32>
      %c3_i32_99 = arith.constant 3 : i32
      %243 = arith.addi %226, %c3_i32_99 : i32
      %244 = arith.index_cast %243 : i32 to index
      %245 = memref.load %arg2[%244] : memref<32xi32, #tpu.memory_space<smem>>
      %246 = arith.index_cast %245 : i32 to index
      %c0_100 = arith.constant 0 : index
      %247 = vector.load %arg3[%246, %c0_100] : memref<128x128xf32, #tpu.memory_space<vmem>>, vector<1x128xf32>
      %248 = arith.addf %242, %247 : vector<1x128xf32>
      %249 = tpu.concatenate %59, %86, %113, %140, %167, %194, %221, %248 in 0 : vector<1x128xf32>, vector<1x128xf32>, vector<1x128xf32>, vector<1x128xf32>, vector<1x128xf32>, vector<1x128xf32>, vector<1x128xf32>, vector<1x128xf32> -> vector<8x128xf32>
      %c8_i32_101 = arith.constant 8 : i32
      %250 = arith.muli %c0_i32_20, %c8_i32_101 : i32
      %251 = tpu.assume_multiple %250, 8 : i32
      %252 = arith.index_cast %251 : i32 to index
      %c0_102 = arith.constant 0 : index
      %253 = vector.load %arg7[%252, %c0_102] : memref<8x128xf32, #tpu.memory_space<vmem>>, vector<8x128xf32>
      tpu.vector_store %arg7[%252, %c0_102], %249 {strides = array<i32>} : memref<8x128xf32, #tpu.memory_space<vmem>>, vector<8x128xf32>,
      %c1_i32_103 = arith.constant 1 : i32
      %cst_104 = arith.constant 0xFF800000 : f32
      %254 = vector.broadcast %cst_104 : f32 to vector<8x1xf32>
      %c0_105 = arith.constant 0 : index
      %c0_106 = arith.constant 0 : index
      %255 = vector.load %arg8[%c0_105, %c0_106] : memref<8x1xf32, #tpu.memory_space<vmem>>, vector<8x1xf32>
      tpu.vector_store %arg8[%c0_105, %c0_106], %254 {strides = array<i32>} : memref<8x1xf32, #tpu.memory_space<vmem>>, vector<8x1xf32>,
      %cst_107 = arith.constant 0.000000e+00 : f32
      %256 = vector.broadcast %cst_107 : f32 to vector<8x1xf32>
      %c0_108 = arith.constant 0 : index
      %c0_109 = arith.constant 0 : index
      %257 = vector.load %arg9[%c0_108, %c0_109] : memref<8x1xf32, #tpu.memory_space<vmem>>, vector<8x1xf32>
      tpu.vector_store %arg9[%c0_108, %c0_109], %256 {strides = array<i32>} : memref<8x1xf32, #tpu.memory_space<vmem>>, vector<8x1xf32>,
    } else {
    }
    %c0 = arith.constant 0 : index
    %c0_1 = arith.constant 0 : index
    %3 = vector.load %arg4[%c0, %c0_1] : memref<128x128xf32, #tpu.memory_space<vmem>>, vector<128x128xf32>
    %c0_2 = arith.constant 0 : index
    %c0_3 = arith.constant 0 : index
    %4 = vector.load %arg7[%c0_2, %c0_3] : memref<8x128xf32, #tpu.memory_space<vmem>>, vector<8x128xf32>
    %cst = arith.constant dense<0.000000e+00> : vector<8x128xf32>
    %5 = tpu.matmul %4, %3, %cst {dimension_numbers = #tpu.dot_dimension_numbers<[1], [1], [0], [0], [0, 0, 1, 0], [], []>} : vector<8x128xf32>, vector<128x128xf32>, vector<8x128xf32> -> vector<8x128xf32>
    %6 = arith.index_cast %arg1 : i32 to index
    %c0_4 = arith.constant 0 : index
    %c0_5 = arith.constant 0 : index
    %7 = vector.load %arg5[%6, %c0_4, %c0_5] : memref<1x1x128xf32, #tpu.memory_space<vmem>>, vector<1x1x128xf32>
    %8 = vector.shape_cast %7 : vector<1x1x128xf32> to vector<1x128xf32>
    %9 = vector.broadcast %8 : vector<1x128xf32> to vector<8x128xf32>
    %10 = arith.addf %5, %9 : vector<8x128xf32>
    %c0_6 = arith.constant 0 : index
    %c0_7 = arith.constant 0 : index
    %11 = vector.load %arg8[%c0_6, %c0_7] : memref<8x1xf32, #tpu.memory_space<vmem>>, vector<8x1xf32>
    %cst_8 = arith.constant dense<0xFF800000> : vector<8xf32>
    %12 = vector.multi_reduction <maximumf>, %10, %cst_8 [1] : vector<8x128xf32> to vector<8xf32>
    %13 = vector.shape_cast %12 : vector<8xf32> to vector<8x1xf32>
    %14 = arith.maximumf %11, %13 : vector<8x1xf32>
    %c0_9 = arith.constant 0 : index
    %c0_10 = arith.constant 0 : index
    %15 = vector.load %arg9[%c0_9, %c0_10] : memref<8x1xf32, #tpu.memory_space<vmem>>, vector<8x1xf32>
    %16 = arith.subf %11, %14 : vector<8x1xf32>
    %17 = math.exp %16 : vector<8x1xf32>
    %18 = arith.mulf %15, %17 : vector<8x1xf32>
    %19 = vector.broadcast %14 : vector<8x1xf32> to vector<8x128xf32>
    %20 = arith.subf %10, %19 : vector<8x128xf32>
    %21 = math.exp %20 : vector<8x128xf32>
    %cst_11 = arith.constant dense<0.000000e+00> : vector<8xf32>
    %22 = vector.multi_reduction <add>, %21, %cst_11 [1] : vector<8x128xf32> to vector<8xf32>
    %23 = vector.shape_cast %22 : vector<8xf32> to vector<8x1xf32>
    %24 = arith.addf %18, %23 : vector<8x1xf32>
    %c0_12 = arith.constant 0 : index
    %c0_13 = arith.constant 0 : index
    %25 = vector.load %arg9[%c0_12, %c0_13] : memref<8x1xf32, #tpu.memory_space<vmem>>, vector<8x1xf32>
    tpu.vector_store %arg9[%c0_12, %c0_13], %24 {strides = array<i32>} : memref<8x1xf32, #tpu.memory_space<vmem>>, vector<8x1xf32>,
    %c0_14 = arith.constant 0 : index
    %c0_15 = arith.constant 0 : index
    %26 = vector.load %arg8[%c0_14, %c0_15] : memref<8x1xf32, #tpu.memory_space<vmem>>, vector<8x1xf32>
    tpu.vector_store %arg8[%c0_14, %c0_15], %14 {strides = array<i32>} : memref<8x1xf32, #tpu.memory_space<vmem>>, vector<8x1xf32>,
    %c0_i32_16 = arith.constant 0 : i32
    %27 = arith.cmpi eq, %arg1, %c0_i32_16 : i32
    %28 = arith.extui %27 : i1 to i32
    %c0_i32_17 = arith.constant 0 : i32
    %29 = arith.cmpi ne, %28, %c0_i32_17 : i32
    scf.if %29 {
      %c0_20 = arith.constant 0 : index
      %c0_21 = arith.constant 0 : index
      %33 = vector.load %arg6[%c0_20, %c0_21] : memref<8x128xf32, #tpu.memory_space<vmem>>, vector<8x128xf32>
      tpu.vector_store %arg6[%c0_20, %c0_21], %10 {strides = array<i32>} : memref<8x128xf32, #tpu.memory_space<vmem>>, vector<8x128xf32>,
    } else {
    }
    %c0_i32_18 = arith.constant 0 : i32
    %30 = arith.cmpi eq, %arg1, %c0_i32_18 : i32
    %31 = arith.extui %30 : i1 to i32
    %c0_i32_19 = arith.constant 0 : i32
    %32 = arith.cmpi ne, %31, %c0_i32_19 : i32
    scf.if %32 {
      %c0_20 = arith.constant 0 : index
      %c0_21 = arith.constant 0 : index
      %33 = vector.load %arg8[%c0_20, %c0_21] : memref<8x1xf32, #tpu.memory_space<vmem>>, vector<8x1xf32>
      %c0_22 = arith.constant 0 : index
      %c0_23 = arith.constant 0 : index
      %34 = vector.load %arg9[%c0_22, %c0_23] : memref<8x1xf32, #tpu.memory_space<vmem>>, vector<8x1xf32>
      %35 = math.log %34 : vector<8x1xf32>
      %36 = arith.addf %33, %35 : vector<8x1xf32>
      %c0_24 = arith.constant 0 : index
      %c0_25 = arith.constant 0 : index
      %37 = vector.load %arg6[%c0_24, %c0_25] : memref<8x128xf32, #tpu.memory_space<vmem>>, vector<8x128xf32>
      %38 = vector.broadcast %36 : vector<8x1xf32> to vector<8x128xf32>
      %39 = arith.subf %37, %38 : vector<8x128xf32>
      %c0_26 = arith.constant 0 : index
      %c0_27 = arith.constant 0 : index
      %40 = vector.load %arg6[%c0_26, %c0_27] : memref<8x128xf32, #tpu.memory_space<vmem>>, vector<8x128xf32>
      tpu.vector_store %arg6[%c0_26, %c0_27], %39 {strides = array<i32>} : memref<8x128xf32, #tpu.memory_space<vmem>>, vector<8x128xf32>,
    } else {
    }
    return
  }
  func.func @transform_0(%arg0: i32, %arg1: i32, %arg2: memref<32xi32, #tpu.memory_space<smem>>) -> (i32, i32) {
    %c0_i32 = arith.constant 0 : i32
    %c0_i32_0 = arith.constant 0 : i32
    %c0_i32_1 = arith.constant 0 : i32
    return %c0_i32, %c0_i32_0 : i32, i32
  }
  func.func @transform_1(%arg0: i32, %arg1: i32, %arg2: memref<32xi32, #tpu.memory_space<smem>>) -> (i32, i32) {
    %c0_i32 = arith.constant 0 : i32
    %c0_i32_0 = arith.constant 0 : i32
    return %arg1, %c0_i32 : i32, i32
  }
  func.func @transform_2(%arg0: i32, %arg1: i32, %arg2: memref<32xi32, #tpu.memory_space<smem>>) -> (i32, i32, i32) {
    %c0_i32 = arith.constant 0 : i32
    %c0_i32_0 = arith.constant 0 : i32
    %c0_i32_1 = arith.constant 0 : i32
    %c0_i32_2 = arith.constant 0 : i32
    return %c0_i32, %c0_i32_0, %c0_i32_1 : i32, i32, i32
  }
  func.func @transform_3(%arg0: i32, %arg1: i32, %arg2: memref<32xi32, #tpu.memory_space<smem>>) -> (i32, i32) {
    %c0_i32 = arith.constant 0 : i32
    %c0_i32_0 = arith.constant 0 : i32
    return %arg0, %c0_i32 : i32, i32
  }
}

module attributes {stable_mosaic.version = 11 : i64} {
  func.func @_cbow_kernel(%arg0: i32, %arg1: i32, %arg2: memref<32xi32, #tpu.memory_space<smem>>, %arg3: memref<128x128xf32, #tpu.memory_space<vmem>>, %arg4: memref<128x128xf32, #tpu.memory_space<vmem>>, %arg5: memref<1x1x128xf32, #tpu.memory_space<vmem>>, %arg6: memref<8x128xf32, #tpu.memory_space<vmem>>, %arg7: memref<8x128xf32, #tpu.memory_space<vmem>>, %arg8: memref<8x1xf32, #tpu.memory_space<vmem>>, %arg9: memref<8x1xf32, #tpu.memory_space<vmem>>) attributes {dimension_semantics = [#tpu.dimension_semantics<parallel>, #tpu.dimension_semantics<arbitrary>], iteration_bounds = array<i64: 1, 1>, scalar_prefetch = 1 : i64, scratch_operands = 3 : i64, tpu.core_type = #tpu.core_type<tc>, window_params = [{pipeline_mode = #tpu.pipeline_mode<synchronous>, transform_indices = @transform_0, window_bounds = array<i64: 128, 128>}, {transform_indices = @transform_1, window_bounds = array<i64: 128, 128>}, {pipeline_mode = #tpu.pipeline_mode<synchronous>, transform_indices = @transform_2, window_bounds = array<i64: 1, 1, 128>}, {transform_indices = @transform_3, window_bounds = array<i64: 8, 128>}]} {
    %c0_i32 = arith.constant 0 : i32
    %0 = arith.cmpi eq, %arg1, %c0_i32 : i32
    %1 = arith.extui %0 : i1 to i32
    %c0_i32_0 = arith.constant 0 : i32
    %2 = arith.cmpi ne, %1, %c0_i32_0 : i32
    scf.if %2 {
      %c0_i32_20 = arith.constant 0 : i32
      %c8_i32 = arith.constant 8 : i32
      %33 = arith.muli %arg0, %c8_i32 : i32
      %c8_i32_21 = arith.constant 8 : i32
      %34 = arith.muli %c0_i32_20, %c8_i32_21 : i32
      %35 = arith.addi %33, %34 : i32
      %c0_i32_22 = arith.constant 0 : i32
      %36 = arith.addi %35, %c0_i32_22 : i32
      %c4_i32 = arith.constant 4 : i32
      %37 = arith.muli %36, %c4_i32 : i32
      %38 = arith.index_cast %37 : i32 to index
      %39 = memref.load %arg2[%38] : memref<32xi32, #tpu.memory_space<smem>>
      %40 = arith.index_cast %39 : i32 to index
      %c0_23 = arith.constant 0 : index
      %41 = vector.load %arg3[%40, %c0_23] : memref<128x128xf32, #tpu.memory_space<vmem>>, vector<1x128xf32>
      %c1_i32 = arith.constant 1 : i32
      %42 = arith.addi %37, %c1_i32 : i32
      %43 = arith.index_cast %42 : i32 to index
      %44 = memref.load %arg2[%43] : memref<32xi32, #tpu.memory_space<smem>>
      %45 = arith.index_cast %44 : i32 to index
      %c0_24 = arith.constant 0 : index
      %46 = vector.load %arg3[%45, %c0_24] : memref<128x128xf32, #tpu.memory_space<vmem>>, vector<1x128xf32>
      %47 = arith.addf %41, %46 : vector<1x128xf32>
      %c2_i32 = arith.constant 2 : i32
      %48 = arith.addi %37, %c2_i32 : i32
      %49 = arith.index_cast %48 : i32 to index
      %50 = memref.load %arg2[%49] : memref<32xi32, #tpu.memory_space<smem>>
      %51 = arith.index_cast %50 : i32 to index
      %c0_25 = arith.constant 0 : index
      %52 = vector.load %arg3[%51, %c0_25] : memref<128x128xf32, #tpu.memory_space<vmem>>, vector<1x128xf32>
      %53 = arith.addf %47, %52 : vector<1x128xf32>
      %c3_i32 = arith.constant 3 : i32
      %54 = arith.addi %37, %c3_i32 : i32
      %55 = arith.index_cast %54 : i32 to index
      %56 = memref.load %arg2[%55] : memref<32xi32, #tpu.memory_space<smem>>
      %57 = arith.index_cast %56 : i32 to index
      %c0_26 = arith.constant 0 : index
      %58 = vector.load %arg3[%57, %c0_26] : memref<128x128xf32, #tpu.memory_space<vmem>>, vector<1x128xf32>
      %59 = arith.addf %53, %58 : vector<1x128xf32>
      %c8_i32_27 = arith.constant 8 : i32
      %60 = arith.muli %arg0, %c8_i32_27 : i32
      %c8_i32_28 = arith.constant 8 : i32
      %61 = arith.muli %c0_i32_20, %c8_i32_28 : i32
      %62 = arith.addi %60, %61 : i32
      %c1_i32_29 = arith.constant 1 : i32
      %63 = arith.addi %62, %c1_i32_29 : i32
      %c4_i32_30 = arith.constant 4 : i32
      %64 = arith.muli %63, %c4_i32_30 : i32
      %65 = arith.index_cast %64 : i32 to index
      %66 = memref.load %arg2[%65] : memref<32xi32, #tpu.memory_space<smem>>
      %67 = arith.index_cast %66 : i32 to index
      %c0_31 = arith.constant 0 : index
      %68 = vector.load %arg3[%67, %c0_31] : memref<128x128xf32, #tpu.memory_space<vmem>>, vector<1x128xf32>
      %c1_i32_32 = arith.constant 1 : i32
      %69 = arith.addi %64, %c1_i32_32 : i32
      %70 = arith.index_cast %69 : i32 to index
      %71 = memref.load %arg2[%70] : memref<32xi32, #tpu.memory_space<smem>>
      %72 = arith.index_cast %71 : i32 to index
      %c0_33 = arith.constant 0 : index
      %73 = vector.load %arg3[%72, %c0_33] : memref<128x128xf32, #tpu.memory_space<vmem>>, vector<1x128xf32>
      %74 = arith.addf %68, %73 : vector<1x128xf32>
      %c2_i32_34 = arith.constant 2 : i32
      %75 = arith.addi %64, %c2_i32_34 : i32
      %76 = arith.index_cast %75 : i32 to index
      %77 = memref.load %arg2[%76] : memref<32xi32, #tpu.memory_space<smem>>
      %78 = arith.index_cast %77 : i32 to index
      %c0_35 = arith.constant 0 : index
      %79 = vector.load %arg3[%78, %c0_35] : memref<128x128xf32, #tpu.memory_space<vmem>>, vector<1x128xf32>
      %80 = arith.addf %74, %79 : vector<1x128xf32>
      %c3_i32_36 = arith.constant 3 : i32
      %81 = arith.addi %64, %c3_i32_36 : i32
      %82 = arith.index_cast %81 : i32 to index
      %83 = memref.load %arg2[%82] : memref<32xi32, #tpu.memory_space<smem>>
      %84 = arith.index_cast %83 : i32 to index
      %c0_37 = arith.constant 0 : index
      %85 = vector.load %arg3[%84, %c0_37] : memref<128x128xf32, #tpu.memory_space<vmem>>, vector<1x128xf32>
      %86 = arith.addf %80, %85 : vector<1x128xf32>
      %c8_i32_38 = arith.constant 8 : i32
      %87 = arith.muli %arg0, %c8_i32_38 : i32
      %c8_i32_39 = arith.constant 8 : i32
      %88 = arith.muli %c0_i32_20, %c8_i32_39 : i32
      %89 = arith.addi %87, %88 : i32
      %c2_i32_40 = arith.constant 2 : i32
      %90 = arith.addi %89, %c2_i32_40 : i32
      %c4_i32_41 = arith.constant 4 : i32
      %91 = arith.muli %90, %c4_i32_41 : i32
      %92 = arith.index_cast %91 : i32 to index
      %93 = memref.load %arg2[%92] : memref<32xi32, #tpu.memory_space<smem>>
      %94 = arith.index_cast %93 : i32 to index
      %c0_42 = arith.constant 0 : index
      %95 = vector.load %arg3[%94, %c0_42] : memref<128x128xf32, #tpu.memory_space<vmem>>, vector<1x128xf32>
      %c1_i32_43 = arith.constant 1 : i32
      %96 = arith.addi %91, %c1_i32_43 : i32
      %97 = arith.index_cast %96 : i32 to index
      %98 = memref.load %arg2[%97] : memref<32xi32, #tpu.memory_space<smem>>
      %99 = arith.index_cast %98 : i32 to index
      %c0_44 = arith.constant 0 : index
      %100 = vector.load %arg3[%99, %c0_44] : memref<128x128xf32, #tpu.memory_space<vmem>>, vector<1x128xf32>
      %101 = arith.addf %95, %100 : vector<1x128xf32>
      %c2_i32_45 = arith.constant 2 : i32
      %102 = arith.addi %91, %c2_i32_45 : i32
      %103 = arith.index_cast %102 : i32 to index
      %104 = memref.load %arg2[%103] : memref<32xi32, #tpu.memory_space<smem>>
      %105 = arith.index_cast %104 : i32 to index
      %c0_46 = arith.constant 0 : index
      %106 = vector.load %arg3[%105, %c0_46] : memref<128x128xf32, #tpu.memory_space<vmem>>, vector<1x128xf32>
      %107 = arith.addf %101, %106 : vector<1x128xf32>
      %c3_i32_47 = arith.constant 3 : i32
      %108 = arith.addi %91, %c3_i32_47 : i32
      %109 = arith.index_cast %108 : i32 to index
      %110 = memref.load %arg2[%109] : memref<32xi32, #tpu.memory_space<smem>>
      %111 = arith.index_cast %110 : i32 to index
      %c0_48 = arith.constant 0 : index
      %112 = vector.load %arg3[%111, %c0_48] : memref<128x128xf32, #tpu.memory_space<vmem>>, vector<1x128xf32>
      %113 = arith.addf %107, %112 : vector<1x128xf32>
      %c8_i32_49 = arith.constant 8 : i32
      %114 = arith.muli %arg0, %c8_i32_49 : i32
      %c8_i32_50 = arith.constant 8 : i32
      %115 = arith.muli %c0_i32_20, %c8_i32_50 : i32
      %116 = arith.addi %114, %115 : i32
      %c3_i32_51 = arith.constant 3 : i32
      %117 = arith.addi %116, %c3_i32_51 : i32
      %c4_i32_52 = arith.constant 4 : i32
      %118 = arith.muli %117, %c4_i32_52 : i32
      %119 = arith.index_cast %118 : i32 to index
      %120 = memref.load %arg2[%119] : memref<32xi32, #tpu.memory_space<smem>>
      %121 = arith.index_cast %120 : i32 to index
      %c0_53 = arith.constant 0 : index
      %122 = vector.load %arg3[%121, %c0_53] : memref<128x128xf32, #tpu.memory_space<vmem>>, vector<1x128xf32>
      %c1_i32_54 = arith.constant 1 : i32
      %123 = arith.addi %118, %c1_i32_54 : i32
      %124 = arith.index_cast %123 : i32 to index
      %125 = memref.load %arg2[%124] : memref<32xi32, #tpu.memory_space<smem>>
      %126 = arith.index_cast %125 : i32 to index
      %c0_55 = arith.constant 0 : index
      %127 = vector.load %arg3[%126, %c0_55] : memref<128x128xf32, #tpu.memory_space<vmem>>, vector<1x128xf32>
      %128 = arith.addf %122, %127 : vector<1x128xf32>
      %c2_i32_56 = arith.constant 2 : i32
      %129 = arith.addi %118, %c2_i32_56 : i32
      %130 = arith.index_cast %129 : i32 to index
      %131 = memref.load %arg2[%130] : memref<32xi32, #tpu.memory_space<smem>>
      %132 = arith.index_cast %131 : i32 to index
      %c0_57 = arith.constant 0 : index
      %133 = vector.load %arg3[%132, %c0_57] : memref<128x128xf32, #tpu.memory_space<vmem>>, vector<1x128xf32>
      %134 = arith.addf %128, %133 : vector<1x128xf32>
      %c3_i32_58 = arith.constant 3 : i32
      %135 = arith.addi %118, %c3_i32_58 : i32
      %136 = arith.index_cast %135 : i32 to index
      %137 = memref.load %arg2[%136] : memref<32xi32, #tpu.memory_space<smem>>
      %138 = arith.index_cast %137 : i32 to index
      %c0_59 = arith.constant 0 : index
      %139 = vector.load %arg3[%138, %c0_59] : memref<128x128xf32, #tpu.memory_space<vmem>>, vector<1x128xf32>
      %140 = arith.addf %134, %139 : vector<1x128xf32>
      %c8_i32_60 = arith.constant 8 : i32
      %141 = arith.muli %arg0, %c8_i32_60 : i32
      %c8_i32_61 = arith.constant 8 : i32
      %142 = arith.muli %c0_i32_20, %c8_i32_61 : i32
      %143 = arith.addi %141, %142 : i32
      %c4_i32_62 = arith.constant 4 : i32
      %144 = arith.addi %143, %c4_i32_62 : i32
      %c4_i32_63 = arith.constant 4 : i32
      %145 = arith.muli %144, %c4_i32_63 : i32
      %146 = arith.index_cast %145 : i32 to index
      %147 = memref.load %arg2[%146] : memref<32xi32, #tpu.memory_space<smem>>
      %148 = arith.index_cast %147 : i32 to index
      %c0_64 = arith.constant 0 : index
      %149 = vector.load %arg3[%148, %c0_64] : memref<128x128xf32, #tpu.memory_space<vmem>>, vector<1x128xf32>
      %c1_i32_65 = arith.constant 1 : i32
      %150 = arith.addi %145, %c1_i32_65 : i32
      %151 = arith.index_cast %150 : i32 to index
      %152 = memref.load %arg2[%151] : memref<32xi32, #tpu.memory_space<smem>>
      %153 = arith.index_cast %152 : i32 to index
      %c0_66 = arith.constant 0 : index
      %154 = vector.load %arg3[%153, %c0_66] : memref<128x128xf32, #tpu.memory_space<vmem>>, vector<1x128xf32>
      %155 = arith.addf %149, %154 : vector<1x128xf32>
      %c2_i32_67 = arith.constant 2 : i32
      %156 = arith.addi %145, %c2_i32_67 : i32
      %157 = arith.index_cast %156 : i32 to index
      %158 = memref.load %arg2[%157] : memref<32xi32, #tpu.memory_space<smem>>
      %159 = arith.index_cast %158 : i32 to index
      %c0_68 = arith.constant 0 : index
      %160 = vector.load %arg3[%159, %c0_68] : memref<128x128xf32, #tpu.memory_space<vmem>>, vector<1x128xf32>
      %161 = arith.addf %155, %160 : vector<1x128xf32>
      %c3_i32_69 = arith.constant 3 : i32
      %162 = arith.addi %145, %c3_i32_69 : i32
      %163 = arith.index_cast %162 : i32 to index
      %164 = memref.load %arg2[%163] : memref<32xi32, #tpu.memory_space<smem>>
      %165 = arith.index_cast %164 : i32 to index
      %c0_70 = arith.constant 0 : index
      %166 = vector.load %arg3[%165, %c0_70] : memref<128x128xf32, #tpu.memory_space<vmem>>, vector<1x128xf32>
      %167 = arith.addf %161, %166 : vector<1x128xf32>
      %c8_i32_71 = arith.constant 8 : i32
      %168 = arith.muli %arg0, %c8_i32_71 : i32
      %c8_i32_72 = arith.constant 8 : i32
      %169 = arith.muli %c0_i32_20, %c8_i32_72 : i32
      %170 = arith.addi %168, %169 : i32
      %c5_i32 = arith.constant 5 : i32
      %171 = arith.addi %170, %c5_i32 : i32
      %c4_i32_73 = arith.constant 4 : i32
      %172 = arith.muli %171, %c4_i32_73 : i32
      %173 = arith.index_cast %172 : i32 to index
      %174 = memref.load %arg2[%173] : memref<32xi32, #tpu.memory_space<smem>>
      %175 = arith.index_cast %174 : i32 to index
      %c0_74 = arith.constant 0 : index
      %176 = vector.load %arg3[%175, %c0_74] : memref<128x128xf32, #tpu.memory_space<vmem>>, vector<1x128xf32>
      %c1_i32_75 = arith.constant 1 : i32
      %177 = arith.addi %172, %c1_i32_75 : i32
      %178 = arith.index_cast %177 : i32 to index
      %179 = memref.load %arg2[%178] : memref<32xi32, #tpu.memory_space<smem>>
      %180 = arith.index_cast %179 : i32 to index
      %c0_76 = arith.constant 0 : index
      %181 = vector.load %arg3[%180, %c0_76] : memref<128x128xf32, #tpu.memory_space<vmem>>, vector<1x128xf32>
      %182 = arith.addf %176, %181 : vector<1x128xf32>
      %c2_i32_77 = arith.constant 2 : i32
      %183 = arith.addi %172, %c2_i32_77 : i32
      %184 = arith.index_cast %183 : i32 to index
      %185 = memref.load %arg2[%184] : memref<32xi32, #tpu.memory_space<smem>>
      %186 = arith.index_cast %185 : i32 to index
      %c0_78 = arith.constant 0 : index
      %187 = vector.load %arg3[%186, %c0_78] : memref<128x128xf32, #tpu.memory_space<vmem>>, vector<1x128xf32>
      %188 = arith.addf %182, %187 : vector<1x128xf32>
      %c3_i32_79 = arith.constant 3 : i32
      %189 = arith.addi %172, %c3_i32_79 : i32
      %190 = arith.index_cast %189 : i32 to index
      %191 = memref.load %arg2[%190] : memref<32xi32, #tpu.memory_space<smem>>
      %192 = arith.index_cast %191 : i32 to index
      %c0_80 = arith.constant 0 : index
      %193 = vector.load %arg3[%192, %c0_80] : memref<128x128xf32, #tpu.memory_space<vmem>>, vector<1x128xf32>
      %194 = arith.addf %188, %193 : vector<1x128xf32>
      %c8_i32_81 = arith.constant 8 : i32
      %195 = arith.muli %arg0, %c8_i32_81 : i32
      %c8_i32_82 = arith.constant 8 : i32
      %196 = arith.muli %c0_i32_20, %c8_i32_82 : i32
      %197 = arith.addi %195, %196 : i32
      %c6_i32 = arith.constant 6 : i32
      %198 = arith.addi %197, %c6_i32 : i32
      %c4_i32_83 = arith.constant 4 : i32
      %199 = arith.muli %198, %c4_i32_83 : i32
      %200 = arith.index_cast %199 : i32 to index
      %201 = memref.load %arg2[%200] : memref<32xi32, #tpu.memory_space<smem>>
      %202 = arith.index_cast %201 : i32 to index
      %c0_84 = arith.constant 0 : index
      %203 = vector.load %arg3[%202, %c0_84] : memref<128x128xf32, #tpu.memory_space<vmem>>, vector<1x128xf32>
      %c1_i32_85 = arith.constant 1 : i32
      %204 = arith.addi %199, %c1_i32_85 : i32
      %205 = arith.index_cast %204 : i32 to index
      %206 = memref.load %arg2[%205] : memref<32xi32, #tpu.memory_space<smem>>
      %207 = arith.index_cast %206 : i32 to index
      %c0_86 = arith.constant 0 : index
      %208 = vector.load %arg3[%207, %c0_86] : memref<128x128xf32, #tpu.memory_space<vmem>>, vector<1x128xf32>
      %209 = arith.addf %203, %208 : vector<1x128xf32>
      %c2_i32_87 = arith.constant 2 : i32
      %210 = arith.addi %199, %c2_i32_87 : i32
      %211 = arith.index_cast %210 : i32 to index
      %212 = memref.load %arg2[%211] : memref<32xi32, #tpu.memory_space<smem>>
      %213 = arith.index_cast %212 : i32 to index
      %c0_88 = arith.constant 0 : index
      %214 = vector.load %arg3[%213, %c0_88] : memref<128x128xf32, #tpu.memory_space<vmem>>, vector<1x128xf32>
      %215 = arith.addf %209, %214 : vector<1x128xf32>
      %c3_i32_89 = arith.constant 3 : i32
      %216 = arith.addi %199, %c3_i32_89 : i32
      %217 = arith.index_cast %216 : i32 to index
      %218 = memref.load %arg2[%217] : memref<32xi32, #tpu.memory_space<smem>>
      %219 = arith.index_cast %218 : i32 to index
      %c0_90 = arith.constant 0 : index
      %220 = vector.load %arg3[%219, %c0_90] : memref<128x128xf32, #tpu.memory_space<vmem>>, vector<1x128xf32>
      %221 = arith.addf %215, %220 : vector<1x128xf32>
      %c8_i32_91 = arith.constant 8 : i32
      %222 = arith.muli %arg0, %c8_i32_91 : i32
      %c8_i32_92 = arith.constant 8 : i32
      %223 = arith.muli %c0_i32_20, %c8_i32_92 : i32
      %224 = arith.addi %222, %223 : i32
      %c7_i32 = arith.constant 7 : i32
      %225 = arith.addi %224, %c7_i32 : i32
      %c4_i32_93 = arith.constant 4 : i32
      %226 = arith.muli %225, %c4_i32_93 : i32
      %227 = arith.index_cast %226 : i32 to index
      %228 = memref.load %arg2[%227] : memref<32xi32, #tpu.memory_space<smem>>
      %229 = arith.index_cast %228 : i32 to index
      %c0_94 = arith.constant 0 : index
      %230 = vector.load %arg3[%229, %c0_94] : memref<128x128xf32, #tpu.memory_space<vmem>>, vector<1x128xf32>
      %c1_i32_95 = arith.constant 1 : i32
      %231 = arith.addi %226, %c1_i32_95 : i32
      %232 = arith.index_cast %231 : i32 to index
      %233 = memref.load %arg2[%232] : memref<32xi32, #tpu.memory_space<smem>>
      %234 = arith.index_cast %233 : i32 to index
      %c0_96 = arith.constant 0 : index
      %235 = vector.load %arg3[%234, %c0_96] : memref<128x128xf32, #tpu.memory_space<vmem>>, vector<1x128xf32>
      %236 = arith.addf %230, %235 : vector<1x128xf32>
      %c2_i32_97 = arith.constant 2 : i32
      %237 = arith.addi %226, %c2_i32_97 : i32
      %238 = arith.index_cast %237 : i32 to index
      %239 = memref.load %arg2[%238] : memref<32xi32, #tpu.memory_space<smem>>
      %240 = arith.index_cast %239 : i32 to index
      %c0_98 = arith.constant 0 : index
      %241 = vector.load %arg3[%240, %c0_98] : memref<128x128xf32, #tpu.memory_space<vmem>>, vector<1x128xf32>
      %242 = arith.addf %236, %241 : vector<1x128xf32>
      %c3_i32_99 = arith.constant 3 : i32
      %243 = arith.addi %226, %c3_i32_99 : i32
      %244 = arith.index_cast %243 : i32 to index
      %245 = memref.load %arg2[%244] : memref<32xi32, #tpu.memory_space<smem>>
      %246 = arith.index_cast %245 : i32 to index
      %c0_100 = arith.constant 0 : index
      %247 = vector.load %arg3[%246, %c0_100] : memref<128x128xf32, #tpu.memory_space<vmem>>, vector<1x128xf32>
      %248 = arith.addf %242, %247 : vector<1x128xf32>
      %249 = tpu.concatenate %59, %86, %113, %140, %167, %194, %221, %248 in 0 : vector<1x128xf32>, vector<1x128xf32>, vector<1x128xf32>, vector<1x128xf32>, vector<1x128xf32>, vector<1x128xf32>, vector<1x128xf32>, vector<1x128xf32> -> vector<8x128xf32>
      %c8_i32_101 = arith.constant 8 : i32
      %250 = arith.muli %c0_i32_20, %c8_i32_101 : i32
      %251 = tpu.assume_multiple %250, 8 : i32
      %252 = arith.index_cast %251 : i32 to index
      %c0_102 = arith.constant 0 : index
      %253 = vector.load %arg7[%252, %c0_102] : memref<8x128xf32, #tpu.memory_space<vmem>>, vector<8x128xf32>
      tpu.vector_store %arg7[%252, %c0_102], %249 {strides = array<i32>} : memref<8x128xf32, #tpu.memory_space<vmem>>, vector<8x128xf32>,
      %c1_i32_103 = arith.constant 1 : i32
      %cst_104 = arith.constant 0xFF800000 : f32
      %254 = vector.broadcast %cst_104 : f32 to vector<8x1xf32>
      %c0_105 = arith.constant 0 : index
      %c0_106 = arith.constant 0 : index
      %255 = vector.load %arg8[%c0_105, %c0_106] : memref<8x1xf32, #tpu.memory_space<vmem>>, vector<8x1xf32>
      tpu.vector_store %arg8[%c0_105, %c0_106], %254 {strides = array<i32>} : memref<8x1xf32, #tpu.memory_space<vmem>>, vector<8x1xf32>,
      %cst_107 = arith.constant 0.000000e+00 : f32
      %256 = vector.broadcast %cst_107 : f32 to vector<8x1xf32>
      %c0_108 = arith.constant 0 : index
      %c0_109 = arith.constant 0 : index
      %257 = vector.load %arg9[%c0_108, %c0_109] : memref<8x1xf32, #tpu.memory_space<vmem>>, vector<8x1xf32>
      tpu.vector_store %arg9[%c0_108, %c0_109], %256 {strides = array<i32>} : memref<8x1xf32, #tpu.memory_space<vmem>>, vector<8x1xf32>,
    } else {
    }
    %c0 = arith.constant 0 : index
    %c0_1 = arith.constant 0 : index
    %3 = vector.load %arg4[%c0, %c0_1] : memref<128x128xf32, #tpu.memory_space<vmem>>, vector<128x128xf32>
    %c0_2 = arith.constant 0 : index
    %c0_3 = arith.constant 0 : index
    %4 = vector.load %arg7[%c0_2, %c0_3] : memref<8x128xf32, #tpu.memory_space<vmem>>, vector<8x128xf32>
    %cst = arith.constant dense<0.000000e+00> : vector<8x128xf32>
    %5 = tpu.matmul %4, %3, %cst {dimension_numbers = #tpu.dot_dimension_numbers<[1], [1], [0], [0], [0, 0, 1, 0], [], []>} : vector<8x128xf32>, vector<128x128xf32>, vector<8x128xf32> -> vector<8x128xf32>
    %6 = arith.index_cast %arg1 : i32 to index
    %c0_4 = arith.constant 0 : index
    %c0_5 = arith.constant 0 : index
    %7 = vector.load %arg5[%6, %c0_4, %c0_5] : memref<1x1x128xf32, #tpu.memory_space<vmem>>, vector<1x1x128xf32>
    %8 = vector.shape_cast %7 : vector<1x1x128xf32> to vector<1x128xf32>
    %9 = vector.broadcast %8 : vector<1x128xf32> to vector<8x128xf32>
    %10 = arith.addf %5, %9 : vector<8x128xf32>
    %c0_6 = arith.constant 0 : index
    %c0_7 = arith.constant 0 : index
    %11 = vector.load %arg8[%c0_6, %c0_7] : memref<8x1xf32, #tpu.memory_space<vmem>>, vector<8x1xf32>
    %cst_8 = arith.constant dense<0xFF800000> : vector<8xf32>
    %12 = vector.multi_reduction <maximumf>, %10, %cst_8 [1] : vector<8x128xf32> to vector<8xf32>
    %13 = vector.shape_cast %12 : vector<8xf32> to vector<8x1xf32>
    %14 = arith.maximumf %11, %13 : vector<8x1xf32>
    %c0_9 = arith.constant 0 : index
    %c0_10 = arith.constant 0 : index
    %15 = vector.load %arg9[%c0_9, %c0_10] : memref<8x1xf32, #tpu.memory_space<vmem>>, vector<8x1xf32>
    %16 = arith.subf %11, %14 : vector<8x1xf32>
    %17 = math.exp %16 : vector<8x1xf32>
    %18 = arith.mulf %15, %17 : vector<8x1xf32>
    %19 = vector.broadcast %14 : vector<8x1xf32> to vector<8x128xf32>
    %20 = arith.subf %10, %19 : vector<8x128xf32>
    %21 = math.exp %20 : vector<8x128xf32>
    %cst_11 = arith.constant dense<0.000000e+00> : vector<8xf32>
    %22 = vector.multi_reduction <add>, %21, %cst_11 [1] : vector<8x128xf32> to vector<8xf32>
    %23 = vector.shape_cast %22 : vector<8xf32> to vector<8x1xf32>
    %24 = arith.addf %18, %23 : vector<8x1xf32>
    %c0_12 = arith.constant 0 : index
    %c0_13 = arith.constant 0 : index
    %25 = vector.load %arg9[%c0_12, %c0_13] : memref<8x1xf32, #tpu.memory_space<vmem>>, vector<8x1xf32>
    tpu.vector_store %arg9[%c0_12, %c0_13], %24 {strides = array<i32>} : memref<8x1xf32, #tpu.memory_space<vmem>>, vector<8x1xf32>,
    %c0_14 = arith.constant 0 : index
    %c0_15 = arith.constant 0 : index
    %26 = vector.load %arg8[%c0_14, %c0_15] : memref<8x1xf32, #tpu.memory_space<vmem>>, vector<8x1xf32>
    tpu.vector_store %arg8[%c0_14, %c0_15], %14 {strides = array<i32>} : memref<8x1xf32, #tpu.memory_space<vmem>>, vector<8x1xf32>,
    %c0_i32_16 = arith.constant 0 : i32
    %27 = arith.cmpi eq, %arg1, %c0_i32_16 : i32
    %28 = arith.extui %27 : i1 to i32
    %c0_i32_17 = arith.constant 0 : i32
    %29 = arith.cmpi ne, %28, %c0_i32_17 : i32
    scf.if %29 {
      %c0_20 = arith.constant 0 : index
      %c0_21 = arith.constant 0 : index
      %33 = vector.load %arg6[%c0_20, %c0_21] : memref<8x128xf32, #tpu.memory_space<vmem>>, vector<8x128xf32>
      tpu.vector_store %arg6[%c0_20, %c0_21], %10 {strides = array<i32>} : memref<8x128xf32, #tpu.memory_space<vmem>>, vector<8x128xf32>,
    } else {
    }
    %c0_i32_18 = arith.constant 0 : i32
    %30 = arith.cmpi eq, %arg1, %c0_i32_18 : i32
    %31 = arith.extui %30 : i1 to i32
    %c0_i32_19 = arith.constant 0 : i32
    %32 = arith.cmpi ne, %31, %c0_i32_19 : i32
    scf.if %32 {
      %c0_20 = arith.constant 0 : index
      %c0_21 = arith.constant 0 : index
      %33 = vector.load %arg8[%c0_20, %c0_21] : memref<8x1xf32, #tpu.memory_space<vmem>>, vector<8x1xf32>
      %c0_22 = arith.constant 0 : index
      %c0_23 = arith.constant 0 : index
      %34 = vector.load %arg9[%c0_22, %c0_23] : memref<8x1xf32, #tpu.memory_space<vmem>>, vector<8x1xf32>
      %35 = math.log %34 : vector<8x1xf32>
      %36 = arith.addf %33, %35 : vector<8x1xf32>
      %c0_24 = arith.constant 0 : index
      %c0_25 = arith.constant 0 : index
      %37 = vector.load %arg6[%c0_24, %c0_25] : memref<8x128xf32, #tpu.memory_space<vmem>>, vector<8x128xf32>
      %38 = vector.broadcast %36 : vector<8x1xf32> to vector<8x128xf32>
      %39 = arith.subf %37, %38 : vector<8x128xf32>
      %c0_26 = arith.constant 0 : index
      %c0_27 = arith.constant 0 : index
      %40 = vector.load %arg6[%c0_26, %c0_27] : memref<8x128xf32, #tpu.memory_space<vmem>>, vector<8x128xf32>
      tpu.vector_store %arg6[%c0_26, %c0_27], %39 {strides = array<i32>} : memref<8x128xf32, #tpu.memory_space<vmem>>, vector<8x128xf32>,
    } else {
    }
    return
  }
  func.func @transform_0(%arg0: i32, %arg1: i32, %arg2: memref<32xi32, #tpu.memory_space<smem>>) -> (i32, i32) {
    %c0_i32 = arith.constant 0 : i32
    %c0_i32_0 = arith.constant 0 : i32
    %c0_i32_1 = arith.constant 0 : i32
    return %c0_i32, %c0_i32_0 : i32, i32
  }
  func.func @transform_1(%arg0: i32, %arg1: i32, %arg2: memref<32xi32, #tpu.memory_space<smem>>) -> (i32, i32) {
    %c0_i32 = arith.constant 0 : i32
    %c0_i32_0 = arith.constant 0 : i32
    return %arg1, %c0_i32 : i32, i32
  }
  func.func @transform_2(%arg0: i32, %arg1: i32, %arg2: memref<32xi32, #tpu.memory_space<smem>>) -> (i32, i32, i32) {
    %c0_i32 = arith.constant 0 : i32
    %c0_i32_0 = arith.constant 0 : i32
    %c0_i32_1 = arith.constant 0 : i32
    %c0_i32_2 = arith.constant 0 : i32
    return %c0_i32, %c0_i32_0, %c0_i32_1 : i32, i32, i32
  }
  func.func @transform_3(%arg0: i32, %arg1: i32, %arg2: memref<32xi32, #tpu.memory_space<smem>>) -> (i32, i32) {
    %c0_i32 = arith.constant 0 : i32
    %c0_i32_0 = arith.constant 0 : i32
    return %arg0, %c0_i32 : i32, i32
  }
}

</mosaic_0001>

<bundles_post_ra>
// kernel: tpu_custom_call.1
= control target key start
LH: loop header
LB: loop body
LE: loop exit
PB: predicated region body
PF: predicated region fallthrough
CT: control target
= control target key end

     0   :  { %s531_s18 = smov [#allocation6]   ;;  %s671_s0 = inlined_call_operand.hbm [shape: s32[32], index: 0, kind: input, shape index: {}]   ;;  %s672_s1 = inlined_call_operand.hbm [shape: f32[128,128], index: 1, kind: input, shape index: {}]   ;;  %s673_s2 = inlined_call_operand.hbm [shape: f32[128,128], index: 2, kind: input, shape index: {}]   ;;  %s674_s3 = inlined_call_operand.vmem [shape: f32[1,1,128], index: 3, kind: input, shape index: {}]   ;;  %s675_s4 = inlined_call_operand.hbm [shape: f32[8,128], index: 4, kind: output, shape index: {}]  }
   0x1   :  { %s10_s17 = sshll.u32 %s671_s0, 4  ;;  %s11_s17 = int_to_ptr.hbm [resolvable:$true] %s10_s17 }
   0x2   :  { %13 = dma.hbm_to_smem %s11_s17, 16, %s531_s18, [#allocation5] }
   0x3   :  { %523 = dma.done.wait [#allocation5], 16 }
   0x4   :  { %524 = vsyncadd [#allocation5], 4294967280 }
   0x5   :  { %16 = sfence }
   0x6   :  { %17 = vsyncpa [#allocation8], 0 }
   0x7   :  { %18 = vsyncpa [#allocation11], 0 }
   0x8   :  { %19 = vsyncpa [#allocation9], 0  ;;  %s24_s21 = sshll.u32 %s672_s1, 4  ;;  %s532_s22 = smov [#allocation7]   ;;  %s25_s21 = int_to_ptr.hbm [resolvable:$true] %s24_s21 }
   0x9   :  { %s26_s23 = sshll.u32 %s532_s22, 4  ;;  %s37_s0 = sshll.u32 %s673_s2, 4  ;;  %s27_s23 = int_to_ptr.vmem [resolvable:$true] %s26_s23  ;;  %s38_s0 = int_to_ptr.hbm [resolvable:$true] %s37_s0 }
   0xa   :  { %s533_s26 = smov 128   ;;  %s534_s27 = smov 8  }
   0xb   :  { %32 = dma.hbm_to_vmem [thread:$0]  %s25_s21, 2048, %s27_s23, [#allocation8], %s533_s26, %s533_s26, %s534_s27  }
   0xc   :  { %s535_s28 = smov [#allocation10]  }
   0xd   :  { %s39_s29 = sshll.u32 %s535_s28, 4  ;;  %s40_s29 = int_to_ptr.vmem [resolvable:$true] %s39_s29 }
   0xe   :  { %45 = dma.hbm_to_vmem [thread:$0]  %s38_s0, 2048, %s40_s29, [#allocation11], %s533_s26, %s533_s26, %s534_s27  }
   0xf   :  { %525 = dma.done.wait [#allocation8], 2048  }
  0x10   :  { %526 = vsyncadd [#allocation8], 4294965248 }
  0x11   :  { %527 = dma.done.wait [#allocation11], 2048  }
  0x12   :  { %528 = vsyncadd [#allocation11], 4294965248  ;;  %v274_v0 = vld [vmem:[#allocation10 + $0x78] sm:$0xff]  ;;  %v273_v1 = vld [vmem:[#allocation10 + $0x70] sm:$0xff]  ;;  %s574_s1 = sld [smem:[#allocation6]]  ;;  %vm241_vm0 = vcmask 1040384  }
  0x13   :  { %280 = vmatpush.xpose.msra.mxu0 %v274_v0  ;;  %s576_s30 = sld [smem:[#allocation6 + $0x1]]  ;;  %v272_v2 = vld [vmem:[#allocation10 + $0x68] sm:$0xff]  ;;  %v271_v3 = vld [vmem:[#allocation10 + $0x60] sm:$0xff]  ;;  %v270_v4 = vld [vmem:[#allocation10 + $0x58] sm:$0xff]  ;;  %vm243_vm1 = vcmask 1041408   ;;  %vm245_vm2 = vcmask 1042432  }
  0x14   :  { %s578_s2 = sld [smem:[#allocation6 + $0x2]]  ;;  %v269_v5 = vld [vmem:[#allocation10 + $0x50] sm:$0xff]  ;;  %v268_v6 = vld [vmem:[#allocation10 + $0x48] sm:$0xff]  ;;  %v267_v9 = vld [vmem:[#allocation10 + $0x40] sm:$0xff]  ;;  %vm247_vm3 = vcmask 1043456   ;;  %vm249_vm4 = vcmask 1044480  }
  0x15   :  { %s580_s5 = sld [smem:[#allocation6 + $0x3]]  ;;  %v266_v16 = vld [vmem:[#allocation10 + $0x38] sm:$0xff]  ;;  %v265_v28 = vld [vmem:[#allocation10 + $0x30] sm:$0xff]  ;;  %v264_v38 = vld [vmem:[#allocation10 + $0x28] sm:$0xff]  ;;  %vm251_vm5 = vcmask 1045504   ;;  %vm253_vm6 = vcmask 1046528  }
  0x16   :  { %s393_s6 = sld [smem:[#allocation6 + $0x4]]  ;;  %v263_v52 = vld [vmem:[#allocation10 + $0x20] sm:$0xff]  ;;  %v262_v0 = vld [vmem:[#allocation10 + $0x18] sm:$0xff]  ;;  %vm256_vm7 = vcmask 7168  }
  0x17   :  { %281 = vmatpush.xpose.msra.mxu0 %v273_v1  ;;  %s394_s7 = sld [smem:[#allocation6 + $0x5]] }
  0x18   :  { %s582_s8 = sld [smem:[#allocation6 + $0x6]]  ;;  %s62_s29 = scalar_lea.vmem [#allocation7], %s574_s1 }
  0x19   :  { %s584_s9 = sld [smem:[#allocation6 + $0x7]]  ;;  %v63_v14 = vld [vmem:[%s62_s29] sm:$0x1] }
  0x1a   :  { %s397_s10 = sld [smem:[#allocation6 + $0x8]] }
  0x1b   :  { %282 = vmatpush.xpose.msra.mxu0 %v272_v2  ;;  %s586_s11 = sld [smem:[#allocation6 + $0x9]] }
  0x1c   :  { %s588_s12 = sld [smem:[#allocation6 + $0xa]]  ;;  %s83_s21 = scalar_lea.vmem [#allocation7], %s393_s6 }
  0x1d   :  { %s590_s13 = sld [smem:[#allocation6 + $0xb]]  ;;  %v84_v7 = vld [vmem:[%s83_s21] sm:$0x1]  ;;  %s87_s22 = scalar_lea.vmem [#allocation7], %s394_s7 }
  0x1e   :  { %s592_s14 = sld [smem:[#allocation6 + $0xc]]  ;;  %v88_v8 = vld [vmem:[%s87_s22] sm:$0x1]  ;;  %s92_s26 = scalar_lea.vmem [#allocation7], %s582_s8 }
  0x1f   :  { %283 = vmatpush.xpose.msra.mxu0 %v271_v3  ;;  %s594_s15 = sld [smem:[#allocation6 + $0xd]]  ;;  %v89_v10 = vadd.f32 %v88_v8, %v84_v7  ;;  %v93_v12 = vld [vmem:[%s92_s26] sm:$0x1]  ;;  %s66_s6 = scalar_lea.vmem [#allocation7], %s576_s30 }
  0x20   :  { %s596_s16 = sld [smem:[#allocation6 + $0xe]]  ;;  %s103_s0 = scalar_lea.vmem [#allocation7], %s397_s10  ;;  %v67_v15 = vld [vmem:[%s66_s6] sm:$0x1] }
  0x21   :  { %s598_s17 = sld [smem:[#allocation6 + $0xf]]  ;;  %v104_v11 = vld [vmem:[%s103_s0] sm:$0x1]  ;;  %s107_s27 = scalar_lea.vmem [#allocation7], %s586_s11  ;;  %v94_v18 = vadd.f32 %v93_v12, %v89_v10  ;;  %v68_v22 = vadd.f32 %v67_v15, %v63_v14  ;;  %v260_v15 = vld [vmem:[#allocation10 + $0x8] sm:$0xff] }
  0x22   :  { %s600_s18 = sld [smem:[#allocation6 + $0x10]]  ;;  %v108_v13 = vld [vmem:[%s107_s27] sm:$0x1]  ;;  %s112_s10 = scalar_lea.vmem [#allocation7], %s588_s12 }
  0x23   :  { %284 = vmatpush.xpose.msra.mxu0 %v270_v4  ;;  %s602_s19 = sld [smem:[#allocation6 + $0x11]]  ;;  %v113_v17 = vld [vmem:[%s112_s10] sm:$0x1]  ;;  %v109_v19 = vadd.f32 %v108_v13, %v104_v11  ;;  %s71_s21 = scalar_lea.vmem [#allocation7], %s578_s2 }
  0x24   :  { %s604_s20 = sld [smem:[#allocation6 + $0x12]]  ;;  %s123_s11 = scalar_lea.vmem [#allocation7], %s592_s14  ;;  %v72_v23 = vld [vmem:[%s71_s21] sm:$0x1] }
  0x25   :  { %s606_s23 = sld [smem:[#allocation6 + $0x13]]  ;;  %v124_v20 = vld [vmem:[%s123_s11] sm:$0x1]  ;;  %s127_s1 = scalar_lea.vmem [#allocation7], %s594_s15  ;;  %v114_v30 = vadd.f32 %v113_v17, %v109_v19  ;;  %v73_v32 = vadd.f32 %v72_v23, %v68_v22  ;;  %v259_v19 = vld [vmem:[#allocation10] sm:$0xff]  ;;  %v536_v22 = vmov -inf  }
  0x26   :  { %s608_s24 = sld [smem:[#allocation6 + $0x14]]  ;;  %v128_v21 = vld [vmem:[%s127_s1] sm:$0x1]  ;;  %s97_s22 = scalar_lea.vmem [#allocation7], %s584_s9  ;;  %257 = vst.msk [vmem:[#allocation3] sm:$0xff] %vm256_vm7, %v536_v22 }
  0x27   :  { %285 = vmatpush.xpose.msra.mxu0 %v269_v5  ;;  %s610_s25 = sld [smem:[#allocation6 + $0x15]]  ;;  %v98_v24 = vld [vmem:[%s97_s22] sm:$0x1]  ;;  %v129_v26 = vadd.f32 %v128_v21, %v124_v20  ;;  %s132_s2 = scalar_lea.vmem [#allocation7], %s596_s16 }
  0x28   :  { %s614_s28 = sld [smem:[#allocation6 + $0x18]]  ;;  %s143_s0 = scalar_lea.vmem [#allocation7], %s600_s18  ;;  %v99_v29 = vadd.f32 %v98_v24, %v94_v18  ;;  %v133_v31 = vld [vmem:[%s132_s2] sm:$0x1] }
  0x29   :  { %s618_s7 = sld [smem:[#allocation6 + $0x19]]  ;;  %v144_v25 = vld [vmem:[%s143_s0] sm:$0x1]  ;;  %s147_s14 = scalar_lea.vmem [#allocation7], %s602_s19  ;;  %v134_v39 = vadd.f32 %v133_v31, %v129_v26  ;;  %v537_v26 = vmov 0  }
  0x2a   :  { %s621_s8 = sld [smem:[#allocation6 + $0x16]]  ;;  %v148_v27 = vld [vmem:[%s147_s14] sm:$0x1]  ;;  %s76_s18 = scalar_lea.vmem [#allocation7], %s580_s5  ;;  %v221_v43 = vrot.slane %v99_v29, 7  ;;  %430 = vset.pattern.permute.xlu0 %v537_v26  ;;  %431 = vset.pattern.permute.xlu1 %v537_v26 }
  0x2b   :  { %286 = vmatpush.xpose.msra.mxu0 %v268_v6  ;;  %s625_s30 = sld [smem:[#allocation6 + $0x1a]]  ;;  %v77_v33 = vld [vmem:[%s76_s18] sm:$0x1]  ;;  %s117_s27 = scalar_lea.vmem [#allocation7], %s590_s13  ;;  %v149_v35 = vadd.f32 %v148_v27, %v144_v25  ;;  %v538_v27 = vmov 0.0  }
  0x2c   :  { %s629_s12 = sld [smem:[#allocation6 + $0x1c]]  ;;  %v118_v34 = vld [vmem:[%s117_s27] sm:$0x1]  ;;  %s163_s29 = scalar_lea.vmem [#allocation7], %s608_s24  ;;  %v78_v44 = vadd.f32 %v77_v33, %v73_v32  ;;  %258 = vst.msk [vmem:[#allocation4] sm:$0xff] %vm256_vm7, %v538_v27 }
  0x2d   :  { %s632_s26 = sld [smem:[#allocation6 + $0x1d]]  ;;  %v164_v36 = vld [vmem:[%s163_s29] sm:$0x1]  ;;  %s167_s6 = scalar_lea.vmem [#allocation7], %s610_s25  ;;  %v119_v41 = vadd.f32 %v118_v34, %v114_v30 }
  0x2e   :  { %s635_s15 = sld [smem:[#allocation6 + $0x17]]  ;;  %v168_v37 = vld [vmem:[%s167_s6] sm:$0x1]  ;;  %s152_s16 = scalar_lea.vmem [#allocation7], %s604_s20  ;;  %v242_v59 = vsel %vm241_vm0, %v78_v44, %v221_v43 }
  0x2f   :  { %287 = vmatpush.xpose.msra.mxu0 %v267_v9  ;;  %s638_s9 = sld [smem:[#allocation6 + $0x1b]]  ;;  %v153_v40 = vld [vmem:[%s152_s16] sm:$0x1]  ;;  %s137_s5 = scalar_lea.vmem [#allocation7], %s598_s17  ;;  %v169_v45 = vadd.f32 %v168_v37, %v164_v36  ;;  %v224_v56 = vrot.slane %v119_v41, 6 }
  0x30   :  { %s642_s19 = sld [smem:[#allocation6 + $0x1e]]  ;;  %v138_v42 = vld [vmem:[%s137_s5] sm:$0x1]  ;;  %s183_s24 = scalar_lea.vmem [#allocation7], %s614_s28  ;;  %v154_v48 = vadd.f32 %v153_v40, %v149_v35 }
  0x31   :  { %s648_s13 = sld [smem:[#allocation6 + $0x1f]]  ;;  %v184_v46 = vld [vmem:[%s183_s24] sm:$0x1]  ;;  %s187_s25 = scalar_lea.vmem [#allocation7], %s618_s7  ;;  %v139_v50 = vadd.f32 %v138_v42, %v134_v39  ;;  %v244_v3 = vsel %vm243_vm1, %v242_v59, %v224_v56 }
  0x32   :  { %v188_v47 = vld [vmem:[%s187_s25] sm:$0x1]  ;;  %s172_s10 = scalar_lea.vmem [#allocation7], %s621_s8  ;;  %s157_s17 = scalar_lea.vmem [#allocation7], %s606_s23 }
  0x33   :  { %288 = vmatpush.xpose.msra.mxu0 %v266_v16  ;;  %v173_v49 = vld [vmem:[%s172_s10] sm:$0x1]  ;;  %v189_v53 = vadd.f32 %v188_v47, %v184_v46  ;;  %s203_s20 = scalar_lea.vmem [#allocation7], %s629_s12  ;;  %s207_s11 = scalar_lea.vmem [#allocation7], %s632_s26  ;;  %v227_v63 = vrot.slane %v139_v50, 5 }
  0x34   :  { %v158_v51 = vld [vmem:[%s157_s17] sm:$0x1]  ;;  %v174_v57 = vadd.f32 %v173_v49, %v169_v45  ;;  %s192_s28 = scalar_lea.vmem [#allocation7], %s625_s30  ;;  %s177_s7 = scalar_lea.vmem [#allocation7], %s635_s15 }
  0x35   :  { %v204_v54 = vld [vmem:[%s203_s20] sm:$0x1]  ;;  %v159_v60 = vadd.f32 %v158_v51, %v154_v48  ;;  %s197_s8 = scalar_lea.vmem [#allocation7], %s638_s9  ;;  %v246_v8 = vsel %vm245_vm2, %v244_v3, %v227_v63  ;;  %s347_s26 = sshll.u32 %s675_s4, 4  ;;  %s348_s26 = int_to_ptr.hbm [resolvable:$true] %s347_s26 }
  0x36   :  { %v208_v55 = vld [vmem:[%s207_s11] sm:$0x1]  ;;  %s212_s23 = scalar_lea.vmem [#allocation7], %s642_s19 }
  0x37   :  { %289 = vmatpush.xpose.msra.mxu0 %v265_v28  ;;  %v193_v58 = vld [vmem:[%s192_s28] sm:$0x1]  ;;  %v209_v62 = vadd.f32 %v208_v55, %v204_v54  ;;  %v230_v6 = vrot.slane %v159_v60, 4  ;;  %s217_s1 = scalar_lea.vmem [#allocation7], %s648_s13 }
  0x38   :  { %v178_v61 = vld [vmem:[%s177_s7] sm:$0x1]  ;;  %v194_v1 = vadd.f32 %v193_v58, %v189_v53 }
  0x39   :  { %v213_v2 = vld [vmem:[%s212_s23] sm:$0x1]  ;;  %v179_v4 = vadd.f32 %v178_v61, %v174_v57  ;;  %v248_v13 = vsel %vm247_vm3, %v246_v8, %v230_v6 }
  0x3a   :  { %v198_v5 = vld [vmem:[%s197_s8] sm:$0x1]  ;;  %v214_v7 = vadd.f32 %v213_v2, %v209_v62 }
  0x3b   :  { %290 = vmatpush.xpose.msra.mxu0 %v264_v38  ;;  %v261_v9 = vld [vmem:[#allocation10 + $0x10] sm:$0xff]  ;;  %v199_v10 = vadd.f32 %v198_v5, %v194_v1  ;;  %v233_v12 = vrot.slane %v179_v4, 3  ;;  %v304_v38 = vld [vmem:[#allocation4] sm:$0xff] }
  0x3c   :  { %v218_v11 = vld [vmem:[%s217_s1] sm:$0x1] }
  0x3d   :  { %v219_v14 = vadd.f32 %v218_v11, %v214_v7  ;;  %v236_v16 = vrot.slane %v199_v10, 2  ;;  %v250_v17 = vsel %vm249_vm4, %v248_v13, %v233_v12  ;;  %v432_v23 = vld [vmem:[%s674_s3] ss:$0 sm:$0xff]  ;;  %s539_s3 = smov [#allocation12]  }
  0x3e   :  { %v300_v28 = vld [vmem:[#allocation3] sm:$0xff]  ;;  %s345_s22 = sshll.u32 %s539_s3, 4  ;;  %s346_s22 = int_to_ptr.vmem [resolvable:$true] %s345_s22 }
  0x3f   :  { %291 = vmatpush.xpose.msra.mxu0 %v263_v52  ;;  %v239_v18 = vrot.slane %v219_v14, 1  ;;  %v252_v20 = vsel %vm251_vm5, %v250_v17, %v236_v16 }
  0x41   :  { %v254_v21 = vsel %vm253_vm6, %v252_v20, %v239_v18 }
  0x43   :  { %292 = vmatpush.xpose.msra.mxu0 %v262_v0 }
  0x47   :  { %293 = vmatpush.xpose.msra.mxu0 %v261_v9 }
  0x4b   :  { %294 = vmatpush.xpose.msra.mxu0 %v260_v15 }
  0x4f   :  { %295 = vmatpush.xpose.msra.mxu0 %v259_v19 }
  0x52   :  { %296 = vmatmul.f32.vlgmr.msra.gmra.mxu0 %v254_v21 }
  0xcf   :  { %v297_v24 = vpop.f32.mrf.mxu0 }
  0xd0   :  { %v298_v25 = vadd.f32 %v432_v23, %v297_v24 }
  0xd2   :  { %301 = vmax.xlane.f32.xlu0 %v298_v25 }
 0x145   :  { %v302_v29 = vpop.xlane.xlu0 %301 }
 0x146   :  { %v303_v30 = vmax.f32 %v300_v28, %v302_v29 }
 0x148   :  { %v305_v31 = vsub.f32 %v300_v28, %v303_v30  ;;  %322 = vst.msk [vmem:[#allocation3] sm:$0xff] %vm256_vm7, %v303_v30  ;;  %311 = vperm.xlu0 %430, %v303_v30  }
 0x14a   :  { %v306_v36 = vmul.f32 1.442695, %v305_v31 }
 0x14f   :  { %v327_v45 = vld [vmem:[#allocation3] sm:$0xff] }
 0x1ba   :  { %v312_v32 = vpop.permute.xlu0 %311 }
 0x1bb   :  { %v314_v33 = vsub.f32 %v298_v25, %v312_v32 }
 0x1bd   :  { %v315_v34 = vmul.f32 1.442695, %v314_v33 }
 0x1bf   :  { %433 = vpow2.f32 %v315_v34 }
 0x1c0   :  { %435 = vpow2.f32 %v306_v36 }
 0x1c5   :  { %v434_v35 = vpop.eup %433 }
 0x1c6   :  { %317 = vadd.xlane.f32.xlu1 %v434_v35  ;;  %v436_v37 = vpop.eup %435 }
 0x1c7   :  { %v308_v39 = vmul.f32 %v436_v37, %v304_v38 }
 0x239   :  { %v318_v40 = vpop.xlane.xlu1 %317 }
 0x23a   :  { %v319_v41 = vadd.f32 %v318_v40, %v308_v39 }
 0x23c   :  { %321 = vst.msk [vmem:[#allocation4] sm:$0xff] %vm256_vm7, %v319_v41 }
 0x243   :  { %v328_v42 = vld [vmem:[#allocation4] sm:$0xff] }
 0x244   :  { %437 = vlog2.f32 %v328_v42 }
 0x24a   :  { %v438_v43 = vpop.eup %437 }
 0x24b   :  { %v330_v44 = vmul.f32 0.6931472, %v438_v43 }
 0x24d   :  { %v331_v46 = vadd.f32 %v330_v44, %v327_v45 }
 0x24f   :  { %335 = vperm.xlu1 %431, %v331_v46  }
 0x2c1   :  { %v336_v47 = vpop.permute.xlu1 %335 }
 0x2c2   :  { %v338_v48 = vsub.f32 %v298_v25, %v336_v47 }
 0x2c4   :  { %339 = vst [vmem:[#allocation12] sm:$0xff] %v338_v48 }
 0x2c5   :  { %350 = dma.vmem_to_hbm [thread:$0]  %s346_s22, 128, %s348_s26, [#allocation9]  }
 0x2c6   :  { %529 = dma.done.wait [#allocation9], 128  }
 0x2c7   :  { %530 = vsyncadd [#allocation9], 4294967168 }
 0x2c8   :  { %355 = vsyncpa [#allocation8], 1 }
 0x2c9   :  { %356 = vsyncpa [#allocation11], 1 }
 0x2ca   :  { %357 = vsyncpa [#allocation9], 1 }

// kernel: tpu_custom_call.1
= control target key start
LH: loop header
LB: loop body
LE: loop exit
PB: predicated region body
PF: predicated region fallthrough
CT: control target
= control target key end

     0   :  { %s531_s18 = smov [#allocation6]   ;;  %s671_s0 = inlined_call_operand.hbm [shape: s32[32], index: 0, kind: input, shape index: {}]   ;;  %s672_s1 = inlined_call_operand.hbm [shape: f32[128,128], index: 1, kind: input, shape index: {}]   ;;  %s673_s2 = inlined_call_operand.hbm [shape: f32[128,128], index: 2, kind: input, shape index: {}]   ;;  %s674_s3 = inlined_call_operand.vmem [shape: f32[1,1,128], index: 3, kind: input, shape index: {}]   ;;  %s675_s4 = inlined_call_operand.hbm [shape: f32[8,128], index: 4, kind: output, shape index: {}]  }
   0x1   :  { %s10_s17 = sshll.u32 %s671_s0, 4  ;;  %s11_s17 = int_to_ptr.hbm [resolvable:$true] %s10_s17 }
   0x2   :  { %13 = dma.hbm_to_smem %s11_s17, 16, %s531_s18, [#allocation5] }
   0x3   :  { %523 = dma.done.wait [#allocation5], 16 }
   0x4   :  { %524 = vsyncadd [#allocation5], 4294967280 }
   0x5   :  { %16 = sfence }
   0x6   :  { %17 = vsyncpa [#allocation8], 0 }
   0x7   :  { %18 = vsyncpa [#allocation11], 0 }
   0x8   :  { %19 = vsyncpa [#allocation9], 0  ;;  %s24_s21 = sshll.u32 %s672_s1, 4  ;;  %s532_s22 = smov [#allocation7]   ;;  %s25_s21 = int_to_ptr.hbm [resolvable:$true] %s24_s21 }
   0x9   :  { %s26_s23 = sshll.u32 %s532_s22, 4  ;;  %s37_s0 = sshll.u32 %s673_s2, 4  ;;  %s27_s23 = int_to_ptr.vmem [resolvable:$true] %s26_s23  ;;  %s38_s0 = int_to_ptr.hbm [resolvable:$true] %s37_s0 }
   0xa   :  { %s533_s26 = smov 128   ;;  %s534_s27 = smov 8  }
   0xb   :  { %32 = dma.hbm_to_vmem [thread:$0]  %s25_s21, 2048, %s27_s23, [#allocation8], %s533_s26, %s533_s26, %s534_s27  }
   0xc   :  { %s535_s28 = smov [#allocation10]  }
   0xd   :  { %s39_s29 = sshll.u32 %s535_s28, 4  ;;  %s40_s29 = int_to_ptr.vmem [resolvable:$true] %s39_s29 }
   0xe   :  { %45 = dma.hbm_to_vmem [thread:$0]  %s38_s0, 2048, %s40_s29, [#allocation11], %s533_s26, %s533_s26, %s534_s27  }
   0xf   :  { %525 = dma.done.wait [#allocation8], 2048  }
  0x10   :  { %526 = vsyncadd [#allocation8], 4294965248 }
  0x11   :  { %527 = dma.done.wait [#allocation11], 2048  }
  0x12   :  { %528 = vsyncadd [#allocation11], 4294965248  ;;  %v274_v0 = vld [vmem:[#allocation10 + $0x78] sm:$0xff]  ;;  %v273_v1 = vld [vmem:[#allocation10 + $0x70] sm:$0xff]  ;;  %s574_s1 = sld [smem:[#allocation6]]  ;;  %vm241_vm0 = vcmask 1040384  }
  0x13   :  { %280 = vmatpush.xpose.msra.mxu0 %v274_v0  ;;  %s576_s30 = sld [smem:[#allocation6 + $0x1]]  ;;  %v272_v2 = vld [vmem:[#allocation10 + $0x68] sm:$0xff]  ;;  %v271_v3 = vld [vmem:[#allocation10 + $0x60] sm:$0xff]  ;;  %v270_v4 = vld [vmem:[#allocation10 + $0x58] sm:$0xff]  ;;  %vm243_vm1 = vcmask 1041408   ;;  %vm245_vm2 = vcmask 1042432  }
  0x14   :  { %s578_s2 = sld [smem:[#allocation6 + $0x2]]  ;;  %v269_v5 = vld [vmem:[#allocation10 + $0x50] sm:$0xff]  ;;  %v268_v6 = vld [vmem:[#allocation10 + $0x48] sm:$0xff]  ;;  %v267_v9 = vld [vmem:[#allocation10 + $0x40] sm:$0xff]  ;;  %vm247_vm3 = vcmask 1043456   ;;  %vm249_vm4 = vcmask 1044480  }
  0x15   :  { %s580_s5 = sld [smem:[#allocation6 + $0x3]]  ;;  %v266_v16 = vld [vmem:[#allocation10 + $0x38] sm:$0xff]  ;;  %v265_v28 = vld [vmem:[#allocation10 + $0x30] sm:$0xff]  ;;  %v264_v38 = vld [vmem:[#allocation10 + $0x28] sm:$0xff]  ;;  %vm251_vm5 = vcmask 1045504   ;;  %vm253_vm6 = vcmask 1046528  }
  0x16   :  { %s393_s6 = sld [smem:[#allocation6 + $0x4]]  ;;  %v263_v52 = vld [vmem:[#allocation10 + $0x20] sm:$0xff]  ;;  %v262_v0 = vld [vmem:[#allocation10 + $0x18] sm:$0xff]  ;;  %vm256_vm7 = vcmask 7168  }
  0x17   :  { %281 = vmatpush.xpose.msra.mxu0 %v273_v1  ;;  %s394_s7 = sld [smem:[#allocation6 + $0x5]] }
  0x18   :  { %s582_s8 = sld [smem:[#allocation6 + $0x6]]  ;;  %s62_s29 = scalar_lea.vmem [#allocation7], %s574_s1 }
  0x19   :  { %s584_s9 = sld [smem:[#allocation6 + $0x7]]  ;;  %v63_v14 = vld [vmem:[%s62_s29] sm:$0x1] }
  0x1a   :  { %s397_s10 = sld [smem:[#allocation6 + $0x8]] }
  0x1b   :  { %282 = vmatpush.xpose.msra.mxu0 %v272_v2  ;;  %s586_s11 = sld [smem:[#allocation6 + $0x9]] }
  0x1c   :  { %s588_s12 = sld [smem:[#allocation6 + $0xa]]  ;;  %s83_s21 = scalar_lea.vmem [#allocation7], %s393_s6 }
  0x1d   :  { %s590_s13 = sld [smem:[#allocation6 + $0xb]]  ;;  %v84_v7 = vld [vmem:[%s83_s21] sm:$0x1]  ;;  %s87_s22 = scalar_lea.vmem [#allocation7], %s394_s7 }
  0x1e   :  { %s592_s14 = sld [smem:[#allocation6 + $0xc]]  ;;  %v88_v8 = vld [vmem:[%s87_s22] sm:$0x1]  ;;  %s92_s26 = scalar_lea.vmem [#allocation7], %s582_s8 }
  0x1f   :  { %283 = vmatpush.xpose.msra.mxu0 %v271_v3  ;;  %s594_s15 = sld [smem:[#allocation6 + $0xd]]  ;;  %v89_v10 = vadd.f32 %v88_v8, %v84_v7  ;;  %v93_v12 = vld [vmem:[%s92_s26] sm:$0x1]  ;;  %s66_s6 = scalar_lea.vmem [#allocation7], %s576_s30 }
  0x20   :  { %s596_s16 = sld [smem:[#allocation6 + $0xe]]  ;;  %s103_s0 = scalar_lea.vmem [#allocation7], %s397_s10  ;;  %v67_v15 = vld [vmem:[%s66_s6] sm:$0x1] }
  0x21   :  { %s598_s17 = sld [smem:[#allocation6 + $0xf]]  ;;  %v104_v11 = vld [vmem:[%s103_s0] sm:$0x1]  ;;  %s107_s27 = scalar_lea.vmem [#allocation7], %s586_s11  ;;  %v94_v18 = vadd.f32 %v93_v12, %v89_v10  ;;  %v68_v22 = vadd.f32 %v67_v15, %v63_v14  ;;  %v260_v15 = vld [vmem:[#allocation10 + $0x8] sm:$0xff] }
  0x22   :  { %s600_s18 = sld [smem:[#allocation6 + $0x10]]  ;;  %v108_v13 = vld [vmem:[%s107_s27] sm:$0x1]  ;;  %s112_s10 = scalar_lea.vmem [#allocation7], %s588_s12 }
  0x23   :  { %284 = vmatpush.xpose.msra.mxu0 %v270_v4  ;;  %s602_s19 = sld [smem:[#allocation6 + $0x11]]  ;;  %v113_v17 = vld [vmem:[%s112_s10] sm:$0x1]  ;;  %v109_v19 = vadd.f32 %v108_v13, %v104_v11  ;;  %s71_s21 = scalar_lea.vmem [#allocation7], %s578_s2 }
  0x24   :  { %s604_s20 = sld [smem:[#allocation6 + $0x12]]  ;;  %s123_s11 = scalar_lea.vmem [#allocation7], %s592_s14  ;;  %v72_v23 = vld [vmem:[%s71_s21] sm:$0x1] }
  0x25   :  { %s606_s23 = sld [smem:[#allocation6 + $0x13]]  ;;  %v124_v20 = vld [vmem:[%s123_s11] sm:$0x1]  ;;  %s127_s1 = scalar_lea.vmem [#allocation7], %s594_s15  ;;  %v114_v30 = vadd.f32 %v113_v17, %v109_v19  ;;  %v73_v32 = vadd.f32 %v72_v23, %v68_v22  ;;  %v259_v19 = vld [vmem:[#allocation10] sm:$0xff]  ;;  %v536_v22 = vmov -inf  }
  0x26   :  { %s608_s24 = sld [smem:[#allocation6 + $0x14]]  ;;  %v128_v21 = vld [vmem:[%s127_s1] sm:$0x1]  ;;  %s97_s22 = scalar_lea.vmem [#allocation7], %s584_s9  ;;  %257 = vst.msk [vmem:[#allocation3] sm:$0xff] %vm256_vm7, %v536_v22 }
  0x27   :  { %285 = vmatpush.xpose.msra.mxu0 %v269_v5  ;;  %s610_s25 = sld [smem:[#allocation6 + $0x15]]  ;;  %v98_v24 = vld [vmem:[%s97_s22] sm:$0x1]  ;;  %v129_v26 = vadd.f32 %v128_v21, %v124_v20  ;;  %s132_s2 = scalar_lea.vmem [#allocation7], %s596_s16 }
  0x28   :  { %s614_s28 = sld [smem:[#allocation6 + $0x18]]  ;;  %s143_s0 = scalar_lea.vmem [#allocation7], %s600_s18  ;;  %v99_v29 = vadd.f32 %v98_v24, %v94_v18  ;;  %v133_v31 = vld [vmem:[%s132_s2] sm:$0x1] }
  0x29   :  { %s618_s7 = sld [smem:[#allocation6 + $0x19]]  ;;  %v144_v25 = vld [vmem:[%s143_s0] sm:$0x1]  ;;  %s147_s14 = scalar_lea.vmem [#allocation7], %s602_s19  ;;  %v134_v39 = vadd.f32 %v133_v31, %v129_v26  ;;  %v537_v26 = vmov 0  }
  0x2a   :  { %s621_s8 = sld [smem:[#allocation6 + $0x16]]  ;;  %v148_v27 = vld [vmem:[%s147_s14] sm:$0x1]  ;;  %s76_s18 = scalar_lea.vmem [#allocation7], %s580_s5  ;;  %v221_v43 = vrot.slane %v99_v29, 7  ;;  %430 = vset.pattern.permute.xlu0 %v537_v26  ;;  %431 = vset.pattern.permute.xlu1 %v537_v26 }
  0x2b   :  { %286 = vmatpush.xpose.msra.mxu0 %v268_v6  ;;  %s625_s30 = sld [smem:[#allocation6 + $0x1a]]  ;;  %v77_v33 = vld [vmem:[%s76_s18] sm:$0x1]  ;;  %s117_s27 = scalar_lea.vmem [#allocation7], %s590_s13  ;;  %v149_v35 = vadd.f32 %v148_v27, %v144_v25  ;;  %v538_v27 = vmov 0.0  }
  0x2c   :  { %s629_s12 = sld [smem:[#allocation6 + $0x1c]]  ;;  %v118_v34 = vld [vmem:[%s117_s27] sm:$0x1]  ;;  %s163_s29 = scalar_lea.vmem [#allocation7], %s608_s24  ;;  %v78_v44 = vadd.f32 %v77_v33, %v73_v32  ;;  %258 = vst.msk [vmem:[#allocation4] sm:$0xff] %vm256_vm7, %v538_v27 }
  0x2d   :  { %s632_s26 = sld [smem:[#allocation6 + $0x1d]]  ;;  %v164_v36 = vld [vmem:[%s163_s29] sm:$0x1]  ;;  %s167_s6 = scalar_lea.vmem [#allocation7], %s610_s25  ;;  %v119_v41 = vadd.f32 %v118_v34, %v114_v30 }
  0x2e   :  { %s635_s15 = sld [smem:[#allocation6 + $0x17]]  ;;  %v168_v37 = vld [vmem:[%s167_s6] sm:$0x1]  ;;  %s152_s16 = scalar_lea.vmem [#allocation7], %s604_s20  ;;  %v242_v59 = vsel %vm241_vm0, %v78_v44, %v221_v43 }
  0x2f   :  { %287 = vmatpush.xpose.msra.mxu0 %v267_v9  ;;  %s638_s9 = sld [smem:[#allocation6 + $0x1b]]  ;;  %v153_v40 = vld [vmem:[%s152_s16] sm:$0x1]  ;;  %s137_s5 = scalar_lea.vmem [#allocation7], %s598_s17  ;;  %v169_v45 = vadd.f32 %v168_v37, %v164_v36  ;;  %v224_v56 = vrot.slane %v119_v41, 6 }
  0x30   :  { %s642_s19 = sld [smem:[#allocation6 + $0x1e]]  ;;  %v138_v42 = vld [vmem:[%s137_s5] sm:$0x1]  ;;  %s183_s24 = scalar_lea.vmem [#allocation7], %s614_s28  ;;  %v154_v48 = vadd.f32 %v153_v40, %v149_v35 }
  0x31   :  { %s648_s13 = sld [smem:[#allocation6 + $0x1f]]  ;;  %v184_v46 = vld [vmem:[%s183_s24] sm:$0x1]  ;;  %s187_s25 = scalar_lea.vmem [#allocation7], %s618_s7  ;;  %v139_v50 = vadd.f32 %v138_v42, %v134_v39  ;;  %v244_v3 = vsel %vm243_vm1, %v242_v59, %v224_v56 }
  0x32   :  { %v188_v47 = vld [vmem:[%s187_s25] sm:$0x1]  ;;  %s172_s10 = scalar_lea.vmem [#allocation7], %s621_s8  ;;  %s157_s17 = scalar_lea.vmem [#allocation7], %s606_s23 }
  0x33   :  { %288 = vmatpush.xpose.msra.mxu0 %v266_v16  ;;  %v173_v49 = vld [vmem:[%s172_s10] sm:$0x1]  ;;  %v189_v53 = vadd.f32 %v188_v47, %v184_v46  ;;  %s203_s20 = scalar_lea.vmem [#allocation7], %s629_s12  ;;  %s207_s11 = scalar_lea.vmem [#allocation7], %s632_s26  ;;  %v227_v63 = vrot.slane %v139_v50, 5 }
  0x34   :  { %v158_v51 = vld [vmem:[%s157_s17] sm:$0x1]  ;;  %v174_v57 = vadd.f32 %v173_v49, %v169_v45  ;;  %s192_s28 = scalar_lea.vmem [#allocation7], %s625_s30  ;;  %s177_s7 = scalar_lea.vmem [#allocation7], %s635_s15 }
  0x35   :  { %v204_v54 = vld [vmem:[%s203_s20] sm:$0x1]  ;;  %v159_v60 = vadd.f32 %v158_v51, %v154_v48  ;;  %s197_s8 = scalar_lea.vmem [#allocation7], %s638_s9  ;;  %v246_v8 = vsel %vm245_vm2, %v244_v3, %v227_v63  ;;  %s347_s26 = sshll.u32 %s675_s4, 4  ;;  %s348_s26 = int_to_ptr.hbm [resolvable:$true] %s347_s26 }
  0x36   :  { %v208_v55 = vld [vmem:[%s207_s11] sm:$0x1]  ;;  %s212_s23 = scalar_lea.vmem [#allocation7], %s642_s19 }
  0x37   :  { %289 = vmatpush.xpose.msra.mxu0 %v265_v28  ;;  %v193_v58 = vld [vmem:[%s192_s28] sm:$0x1]  ;;  %v209_v62 = vadd.f32 %v208_v55, %v204_v54  ;;  %v230_v6 = vrot.slane %v159_v60, 4  ;;  %s217_s1 = scalar_lea.vmem [#allocation7], %s648_s13 }
  0x38   :  { %v178_v61 = vld [vmem:[%s177_s7] sm:$0x1]  ;;  %v194_v1 = vadd.f32 %v193_v58, %v189_v53 }
  0x39   :  { %v213_v2 = vld [vmem:[%s212_s23] sm:$0x1]  ;;  %v179_v4 = vadd.f32 %v178_v61, %v174_v57  ;;  %v248_v13 = vsel %vm247_vm3, %v246_v8, %v230_v6 }
  0x3a   :  { %v198_v5 = vld [vmem:[%s197_s8] sm:$0x1]  ;;  %v214_v7 = vadd.f32 %v213_v2, %v209_v62 }
  0x3b   :  { %290 = vmatpush.xpose.msra.mxu0 %v264_v38  ;;  %v261_v9 = vld [vmem:[#allocation10 + $0x10] sm:$0xff]  ;;  %v199_v10 = vadd.f32 %v198_v5, %v194_v1  ;;  %v233_v12 = vrot.slane %v179_v4, 3  ;;  %v304_v38 = vld [vmem:[#allocation4] sm:$0xff] }
  0x3c   :  { %v218_v11 = vld [vmem:[%s217_s1] sm:$0x1] }
  0x3d   :  { %v219_v14 = vadd.f32 %v218_v11, %v214_v7  ;;  %v236_v16 = vrot.slane %v199_v10, 2  ;;  %v250_v17 = vsel %vm249_vm4, %v248_v13, %v233_v12  ;;  %v432_v23 = vld [vmem:[%s674_s3] ss:$0 sm:$0xff]  ;;  %s539_s3 = smov [#allocation12]  }
  0x3e   :  { %v300_v28 = vld [vmem:[#allocation3] sm:$0xff]  ;;  %s345_s22 = sshll.u32 %s539_s3, 4  ;;  %s346_s22 = int_to_ptr.vmem [resolvable:$true] %s345_s22 }
  0x3f   :  { %291 = vmatpush.xpose.msra.mxu0 %v263_v52  ;;  %v239_v18 = vrot.slane %v219_v14, 1  ;;  %v252_v20 = vsel %vm251_vm5, %v250_v17, %v236_v16 }
  0x41   :  { %v254_v21 = vsel %vm253_vm6, %v252_v20, %v239_v18 }
  0x43   :  { %292 = vmatpush.xpose.msra.mxu0 %v262_v0 }
  0x47   :  { %293 = vmatpush.xpose.msra.mxu0 %v261_v9 }
  0x4b   :  { %294 = vmatpush.xpose.msra.mxu0 %v260_v15 }
  0x4f   :  { %295 = vmatpush.xpose.msra.mxu0 %v259_v19 }
  0x52   :  { %296 = vmatmul.f32.vlgmr.msra.gmra.mxu0 %v254_v21 }
  0xcf   :  { %v297_v24 = vpop.f32.mrf.mxu0 }
  0xd0   :  { %v298_v25 = vadd.f32 %v432_v23, %v297_v24 }
  0xd2   :  { %301 = vmax.xlane.f32.xlu0 %v298_v25 }
 0x145   :  { %v302_v29 = vpop.xlane.xlu0 %301 }
 0x146   :  { %v303_v30 = vmax.f32 %v300_v28, %v302_v29 }
 0x148   :  { %v305_v31 = vsub.f32 %v300_v28, %v303_v30  ;;  %322 = vst.msk [vmem:[#allocation3] sm:$0xff] %vm256_vm7, %v303_v30  ;;  %311 = vperm.xlu0 %430, %v303_v30  }
 0x14a   :  { %v306_v36 = vmul.f32 1.442695, %v305_v31 }
 0x14f   :  { %v327_v45 = vld [vmem:[#allocation3] sm:$0xff] }
 0x1ba   :  { %v312_v32 = vpop.permute.xlu0 %311 }
 0x1bb   :  { %v314_v33 = vsub.f32 %v298_v25, %v312_v32 }
 0x1bd   :  { %v315_v34 = vmul.f32 1.442695, %v314_v33 }
 0x1bf   :  { %433 = vpow2.f32 %v315_v34 }
 0x1c0   :  { %435 = vpow2.f32 %v306_v36 }
 0x1c5   :  { %v434_v35 = vpop.eup %433 }
 0x1c6   :  { %317 = vadd.xlane.f32.xlu1 %v434_v35  ;;  %v436_v37 = vpop.eup %435 }
 0x1c7   :  { %v308_v39 = vmul.f32 %v436_v37, %v304_v38 }
 0x239   :  { %v318_v40 = vpop.xlane.xlu1 %317 }
 0x23a   :  { %v319_v41 = vadd.f32 %v318_v40, %v308_v39 }
 0x23c   :  { %321 = vst.msk [vmem:[#allocation4] sm:$0xff] %vm256_vm7, %v319_v41 }
 0x243   :  { %v328_v42 = vld [vmem:[#allocation4] sm:$0xff] }
 0x244   :  { %437 = vlog2.f32 %v328_v42 }
 0x24a   :  { %v438_v43 = vpop.eup %437 }
 0x24b   :  { %v330_v44 = vmul.f32 0.6931472, %v438_v43 }
 0x24d   :  { %v331_v46 = vadd.f32 %v330_v44, %v327_v45 }
 0x24f   :  { %335 = vperm.xlu1 %431, %v331_v46  }
 0x2c1   :  { %v336_v47 = vpop.permute.xlu1 %335 }
 0x2c2   :  { %v338_v48 = vsub.f32 %v298_v25, %v336_v47 }
 0x2c4   :  { %339 = vst [vmem:[#allocation12] sm:$0xff] %v338_v48 }
 0x2c5   :  { %350 = dma.vmem_to_hbm [thread:$0]  %s346_s22, 128, %s348_s26, [#allocation9]  }
 0x2c6   :  { %529 = dma.done.wait [#allocation9], 128  }
 0x2c7   :  { %530 = vsyncadd [#allocation9], 4294967168 }
 0x2c8   :  { %355 = vsyncpa [#allocation8], 1 }
 0x2c9   :  { %356 = vsyncpa [#allocation11], 1 }
 0x2ca   :  { %357 = vsyncpa [#allocation9], 1 }

</bundles_post_ra>
